<compile_context>
chip_gen: v6e
topology: v6e:2x2x1
jax: 0.10.0
libtpu: 0.0.40
codegen_flags: <defaults>
</compile_context>

<pallas_src>
import jax
import jax.numpy as jnp
from jax.experimental import pallas as pl
from jax.experimental.pallas import tpu as pltpu


# ----------------------------------------------------------------------------------
# Fused forward kernel
# ----------------------------------------------------------------------------------
def _make_fused_gat_kernel(heads1: int, out1: int):
    def kernel(x_ref, adj_ref, pool_ref,
               w1_ref, as1_ref, ad1_ref, b1_ref,
               w2_ref, as2_ref, ad2_ref, b2_ref,
               wg_ref, bg_ref,
               out_ref, x2_scr):
        neg_inf = jnp.float32(-1e30)
        adj_mask = adj_ref[...] > 0.0                     # [N, N] bool, computed once

        # ---------------- layer 1: GATConv(75 -> 8, heads=8) + ELU -----------------
        xw1 = jnp.dot(x_ref[...], w1_ref[...],
                      preferred_element_type=jnp.float32)                      # [N, H*O]
        # Batched attention logits for all heads (2 matmuls instead of 16 tiny ones).
        # as1/ad1 are [H, H*O] block matrices: row h holds att[h] in lane block h.
        a_dst = jax.lax.dot_general(xw1, ad1_ref[...], (((1,), (1,)), ((), ())),
                                    preferred_element_type=jnp.float32)        # [N, H]
        a_srcT = jax.lax.dot_general(as1_ref[...], xw1, (((1,), (1,)), ((), ())),
                                     preferred_element_type=jnp.float32)       # [H, N]
        b1 = b1_ref[...]                                                        # [1, H*O]

        for h in range(heads1):
            # e[i, j] = LeakyReLU(a_dst[i] + a_src[j], 0.2), masked to edges j -> i.
            e = a_dst[:, h:h + 1] + a_srcT[h:h + 1, :]                          # [N, N]
            e = jnp.where(adj_mask, jnp.where(e > 0, e, 0.2 * e), neg_inf)
            m = jnp.max(e, axis=-1, keepdims=True)
            p = jnp.exp(e - m)                                                  # un-normalized
            denom = jnp.sum(p, axis=-1, keepdims=True)                          # [N, 1]

            xw_h = xw1[:, h * out1:(h + 1) * out1]                              # [N, O]
            agg = jnp.dot(p, xw_h, preferred_element_type=jnp.float32)          # [N, O]
            out_h = agg * pl.reciprocal(denom, approx=True) \
                    + b1[0:1, h * out1:(h + 1) * out1]
            out_h = jnp.where(out_h > 0, out_h, jnp.exp(out_h) - 1.0)           # ELU
            x2_scr[:, h * out1:(h + 1) * out1] = out_h                          # stays in VMEM

        # ---------------- layer 2: GATConv(64 -> 128, heads=1) ---------------------
        xw2 = jnp.dot(x2_scr[...], w2_ref[...],
                      preferred_element_type=jnp.float32)                       # [N, 128]
        a_dst2 = jax.lax.dot_general(xw2, ad2_ref[...], (((1,), (1,)), ((), ())),
                                     preferred_element_type=jnp.float32)        # [N, 1]
        a_src2T = jax.lax.dot_general(as2_ref[...], xw2, (((1,), (1,)), ((), ())),
                                      preferred_element_type=jnp.float32)       # [1, N]
        e2 = a_dst2 + a_src2T
        e2 = jnp.where(adj_mask, jnp.where(e2 > 0, e2, 0.2 * e2), neg_inf)
        m2 = jnp.max(e2, axis=-1, keepdims=True)
        p2 = jnp.exp(e2 - m2)
        denom2 = jnp.sum(p2, axis=-1, keepdims=True)
        agg2 = jnp.dot(p2, xw2, preferred_element_type=jnp.float32)             # [N, 128]
        x4 = agg2 * pl.reciprocal(denom2, approx=True) + b2_ref[...]

        # ---------------- global_add_pool + Linear(128, 1) --------------------------
        pooled = jnp.dot(pool_ref[...], x4, preferred_element_type=jnp.float32)  # [B, 128]
        out_ref[...] = jnp.dot(pooled, wg_ref[...],
                               preferred_element_type=jnp.float32) + bg_ref[...]

    return kernel


def _full2d_spec(arr):
    return pl.BlockSpec(arr.shape, lambda i: (0, 0))


def gat_forward(params, x, adj, pool_mat, *, heads1=8, out1=8):
    n = x.shape[0]
    b = pool_mat.shape[0]
    args = (x, adj, pool_mat,
            params["w1"], params["as1_bd"], params["ad1_bd"], params["b1"],
            params["w2"], params["as2"], params["ad2"], params["b2"],
            params["wg"], params["bg"])
    kernel = _make_fused_gat_kernel(heads1, out1)
    return pl.pallas_call(
        kernel,
        out_shape=jax.ShapeDtypeStruct((b, 1), jnp.float32),
        grid=(1,),
        in_specs=[_full2d_spec(a) for a in args],
        out_specs=pl.BlockSpec((b, 1), lambda i: (0, 0)),
        scratch_shapes=[pltpu.VMEM((n, heads1 * out1), jnp.float32)],
    )(*args)


# ----------------------------------------------------------------------------------
# Parameter init + glue
# ----------------------------------------------------------------------------------
def _glorot(key, shape):
    fan_in, fan_out = shape[-2], shape[-1]
    limit = (6.0 / (fan_in + fan_out)) ** 0.5
    return jax.random.uniform(key, shape, jnp.float32, -limit, limit)


def _att_row_blocks(att):
    """[H, O] per-head attention vectors -> [H, H*O] block matrix.

    Row h contains att[h] in lane block h and zeros elsewhere, so that
    (xw [N, H*O]) contracted with it over the last dim gives the per-head
    attention logits for all heads with a single MXU matmul.
    """
    h, o = att.shape
    eye = jnp.eye(h, dtype=att.dtype)
    return (eye[:, :, None] * att[None, :, :]).reshape(h, h * o)


if __name__ == "__main__":
    key = jax.random.PRNGKey(0)
    keys = jax.random.split(key, 12)

    N, F_IN, E, B = 32, 75, 64, 2   # nodes, in-features, edges, graphs in the batch

    # --- synthetic graph data ---------------------------------------------------
    x = jax.random.normal(keys[0], (N, F_IN), jnp.float32)
    src = jax.random.randint(keys[1], (E,), 0, N)
    dst = jax.random.randint(keys[2], (E,), 0, N)
    batch = jnp.concatenate([jnp.zeros((N // 2,), jnp.int32),
                             jnp.ones((N - N // 2,), jnp.int32)])

    # dense adjacency mask: adj[i, j] = 1 iff edge j -> i, plus self loops
    adj = jnp.zeros((N, N), jnp.float32)
    adj = adj.at[dst, src].set(1.0)
    adj = adj.at[jnp.arange(N), jnp.arange(N)].set(1.0)

    # one-hot pooling matrix for global_add_pool
    pool_mat = (batch[None, :] == jnp.arange(B)[:, None]).astype(jnp.float32)  # [B, N]

    # --- deterministic parameters (shapes match GATConv / Linear __init__) -------
    as1 = _glorot(keys[4], (8, 8))   # conv1 att_src, per head [H, O]
    ad1 = _glorot(keys[5], (8, 8))   # conv1 att_dst
    params = {
        # conv1: GATConv(75, 8, heads=8)
        "w1":     _glorot(keys[3], (75, 8 * 8)),
        "as1_bd": _att_row_blocks(as1),          # [8, 64] block matrix
        "ad1_bd": _att_row_blocks(ad1),          # [8, 64]
        "b1":     jnp.zeros((1, 8 * 8), jnp.float32),
        # conv2: GATConv(64, 128, heads=1)
        "w2":  _glorot(keys[6], (64, 128)),
        "as2": _glorot(keys[7], (1, 128)),
        "ad2": _glorot(keys[8], (1, 128)),
        "b2":  jnp.zeros((1, 128), jnp.float32),
        # gather_layer: Linear(128, 1)
        "wg":  _glorot(keys[9], (128, 1)),
        "bg":  jnp.zeros((1, 1), jnp.float32),
    }

    # TODO(synk): training-mode dropout (p=0.6) on inputs/attention is not applied;
    # this implements the deterministic eval forward pass.

    z = gat_forward(params, x, adj, pool_mat)
    jax.block_until_ready(z)
    assert z.shape == (B, 1) and z.dtype == jnp.float32
    print("KERNEL_OK")
</pallas_src>

<mosaic_0001>
module attributes {stable_mosaic.version = 11 : i64} {
  func.func @kernel(%arg0: i32, %arg1: memref<32x75xf32, #tpu.memory_space<vmem>>, %arg2: memref<32x32xf32, #tpu.memory_space<vmem>>, %arg3: memref<2x32xf32, #tpu.memory_space<vmem>>, %arg4: memref<75x64xf32, #tpu.memory_space<vmem>>, %arg5: memref<8x64xf32, #tpu.memory_space<vmem>>, %arg6: memref<8x64xf32, #tpu.memory_space<vmem>>, %arg7: memref<1x64xf32, #tpu.memory_space<vmem>>, %arg8: memref<64x128xf32, #tpu.memory_space<vmem>>, %arg9: memref<1x128xf32, #tpu.memory_space<vmem>>, %arg10: memref<1x128xf32, #tpu.memory_space<vmem>>, %arg11: memref<1x128xf32, #tpu.memory_space<vmem>>, %arg12: memref<128x1xf32, #tpu.memory_space<vmem>>, %arg13: memref<1x1xf32, #tpu.memory_space<vmem>>, %arg14: memref<2x1xf32, #tpu.memory_space<vmem>>, %arg15: memref<32x64xf32, #tpu.memory_space<vmem>>) attributes {dimension_semantics = [#tpu.dimension_semantics<arbitrary>], iteration_bounds = array<i64: 1>, scalar_prefetch = 0 : i64, scratch_operands = 1 : i64, tpu.core_type = #tpu.core_type<tc>, window_params = [{pipeline_mode = #tpu.pipeline_mode<synchronous>, transform_indices = @transform_0, window_bounds = array<i64: 32, 75>}, {pipeline_mode = #tpu.pipeline_mode<synchronous>, transform_indices = @transform_1, window_bounds = array<i64: 32, 32>}, {pipeline_mode = #tpu.pipeline_mode<synchronous>, transform_indices = @transform_2, window_bounds = array<i64: 2, 32>}, {pipeline_mode = #tpu.pipeline_mode<synchronous>, transform_indices = @transform_3, window_bounds = array<i64: 75, 64>}, {pipeline_mode = #tpu.pipeline_mode<synchronous>, transform_indices = @transform_4, window_bounds = array<i64: 8, 64>}, {pipeline_mode = #tpu.pipeline_mode<synchronous>, transform_indices = @transform_5, window_bounds = array<i64: 8, 64>}, {pipeline_mode = #tpu.pipeline_mode<synchronous>, transform_indices = @transform_6, window_bounds = array<i64: 1, 64>}, {pipeline_mode = #tpu.pipeline_mode<synchronous>, transform_indices = @transform_7, window_bounds = array<i64: 64, 128>}, {pipeline_mode = #tpu.pipeline_mode<synchronous>, transform_indices = @transform_8, window_bounds = array<i64: 1, 128>}, {pipeline_mode = #tpu.pipeline_mode<synchronous>, transform_indices = @transform_9, window_bounds = array<i64: 1, 128>}, {pipeline_mode = #tpu.pipeline_mode<synchronous>, transform_indices = @transform_10, window_bounds = array<i64: 1, 128>}, {pipeline_mode = #tpu.pipeline_mode<synchronous>, transform_indices = @transform_11, window_bounds = array<i64: 128, 1>}, {pipeline_mode = #tpu.pipeline_mode<synchronous>, transform_indices = @transform_12, window_bounds = array<i64: 1, 1>}, {pipeline_mode = #tpu.pipeline_mode<synchronous>, transform_indices = @transform_13, window_bounds = array<i64: 2, 1>}]} {
    %c0 = arith.constant 0 : index
    %c0_0 = arith.constant 0 : index
    %0 = vector.load %arg2[%c0, %c0_0] : memref<32x32xf32, #tpu.memory_space<vmem>>, vector<32x32xf32>
    %cst = arith.constant 0.000000e+00 : f32
    %1 = vector.broadcast %cst : f32 to vector<32x32xf32>
    %2 = arith.cmpf ogt, %0, %1 : vector<32x32xf32>
    %c0_1 = arith.constant 0 : index
    %c0_2 = arith.constant 0 : index
    %3 = vector.load %arg1[%c0_1, %c0_2] : memref<32x75xf32, #tpu.memory_space<vmem>>, vector<32x75xf32>
    %c0_3 = arith.constant 0 : index
    %c0_4 = arith.constant 0 : index
    %4 = vector.load %arg4[%c0_3, %c0_4] : memref<75x64xf32, #tpu.memory_space<vmem>>, vector<75x64xf32>
    %cst_5 = arith.constant dense<0.000000e+00> : vector<32x64xf32>
    %5 = tpu.matmul %3, %4, %cst_5 {dimension_numbers = #tpu.dot_dimension_numbers<[1], [0], [0], [1], [0, 0, 1, 1], [], []>} : vector<32x75xf32>, vector<75x64xf32>, vector<32x64xf32> -> vector<32x64xf32>
    %c0_6 = arith.constant 0 : index
    %c0_7 = arith.constant 0 : index
    %6 = vector.load %arg6[%c0_6, %c0_7] : memref<8x64xf32, #tpu.memory_space<vmem>>, vector<8x64xf32>
    %cst_8 = arith.constant dense<0.000000e+00> : vector<32x8xf32>
    %7 = tpu.matmul %5, %6, %cst_8 {dimension_numbers = #tpu.dot_dimension_numbers<[1], [1], [0], [0], [0, 0, 1, 0], [], []>} : vector<32x64xf32>, vector<8x64xf32>, vector<32x8xf32> -> vector<32x8xf32>
    %c0_9 = arith.constant 0 : index
    %c0_10 = arith.constant 0 : index
    %8 = vector.load %arg5[%c0_9, %c0_10] : memref<8x64xf32, #tpu.memory_space<vmem>>, vector<8x64xf32>
    %cst_11 = arith.constant dense<0.000000e+00> : vector<8x32xf32>
    %9 = tpu.matmul %8, %5, %cst_11 {dimension_numbers = #tpu.dot_dimension_numbers<[1], [1], [0], [0], [0, 0, 1, 0], [], []>} : vector<8x64xf32>, vector<32x64xf32>, vector<8x32xf32> -> vector<8x32xf32>
    %c0_12 = arith.constant 0 : index
    %c0_13 = arith.constant 0 : index
    %10 = vector.load %arg7[%c0_12, %c0_13] : memref<1x64xf32, #tpu.memory_space<vmem>>, vector<1x64xf32>
    %11 = vector.extract_strided_slice %7 {offsets = [0, 0], sizes = [32, 1], strides = [1, 1]} : vector<32x8xf32> to vector<32x1xf32>
    %12 = vector.extract_strided_slice %9 {offsets = [0, 0], sizes = [1, 32], strides = [1, 1]} : vector<8x32xf32> to vector<1x32xf32>
    %13 = vector.broadcast %11 : vector<32x1xf32> to vector<32x32xf32>
    %14 = vector.broadcast %12 : vector<1x32xf32> to vector<32x32xf32>
    %15 = arith.addf %13, %14 : vector<32x32xf32>
    %cst_14 = arith.constant 0.000000e+00 : f32
    %16 = vector.broadcast %cst_14 : f32 to vector<32x32xf32>
    %17 = arith.cmpf ogt, %15, %16 : vector<32x32xf32>
    %cst_15 = arith.constant 2.000000e-01 : f32
    %18 = vector.broadcast %cst_15 : f32 to vector<32x32xf32>
    %19 = arith.mulf %18, %15 : vector<32x32xf32>
    %20 = arith.select %17, %15, %19 : vector<32x32xi1>, vector<32x32xf32>
    %cst_16 = arith.constant -1.000000e+30 : f32
    %21 = vector.broadcast %cst_16 : f32 to vector<32x32xf32>
    %22 = arith.select %2, %20, %21 : vector<32x32xi1>, vector<32x32xf32>
    %cst_17 = arith.constant dense<0xFF800000> : vector<32xf32>
    %23 = vector.multi_reduction <maximumf>, %22, %cst_17 [1] : vector<32x32xf32> to vector<32xf32>
    %24 = vector.shape_cast %23 : vector<32xf32> to vector<32x1xf32>
    %25 = vector.broadcast %24 : vector<32x1xf32> to vector<32x32xf32>
    %26 = arith.subf %22, %25 : vector<32x32xf32>
    %27 = math.exp %26 : vector<32x32xf32>
    %cst_18 = arith.constant dense<0.000000e+00> : vector<32xf32>
    %28 = vector.multi_reduction <add>, %27, %cst_18 [1] : vector<32x32xf32> to vector<32xf32>
    %29 = vector.shape_cast %28 : vector<32xf32> to vector<32x1xf32>
    %30 = vector.extract_strided_slice %5 {offsets = [0, 0], sizes = [32, 8], strides = [1, 1]} : vector<32x64xf32> to vector<32x8xf32>
    %cst_19 = arith.constant dense<0.000000e+00> : vector<32x8xf32>
    %31 = tpu.matmul %27, %30, %cst_19 {dimension_numbers = #tpu.dot_dimension_numbers<[1], [0], [0], [1], [0, 0, 1, 1], [], []>} : vector<32x32xf32>, vector<32x8xf32>, vector<32x8xf32> -> vector<32x8xf32>
    %32 = tpu.reciprocal %29 {approx = true} : vector<32x1xf32> -> vector<32x1xf32>
    %33 = vector.broadcast %32 : vector<32x1xf32> to vector<32x8xf32>
    %34 = arith.mulf %31, %33 : vector<32x8xf32>
    %35 = vector.extract_strided_slice %10 {offsets = [0, 0], sizes = [1, 8], strides = [1, 1]} : vector<1x64xf32> to vector<1x8xf32>
    %36 = vector.broadcast %35 : vector<1x8xf32> to vector<32x8xf32>
    %37 = arith.addf %34, %36 : vector<32x8xf32>
    %cst_20 = arith.constant 0.000000e+00 : f32
    %38 = vector.broadcast %cst_20 : f32 to vector<32x8xf32>
    %39 = arith.cmpf ogt, %37, %38 : vector<32x8xf32>
    %40 = math.exp %37 : vector<32x8xf32>
    %cst_21 = arith.constant 1.000000e+00 : f32
    %41 = vector.broadcast %cst_21 : f32 to vector<32x8xf32>
    %42 = arith.subf %40, %41 : vector<32x8xf32>
    %43 = arith.select %39, %37, %42 : vector<32x8xi1>, vector<32x8xf32>
    %c0_22 = arith.constant 0 : index
    %c0_23 = arith.constant 0 : index
    %44 = vector.load %arg15[%c0_22, %c0_23] : memref<32x64xf32, #tpu.memory_space<vmem>>, vector<32x8xf32>
    tpu.vector_store %arg15[%c0_22, %c0_23], %43 {strides = array<i32>} : memref<32x64xf32, #tpu.memory_space<vmem>>, vector<32x8xf32>,
    %45 = vector.extract_strided_slice %7 {offsets = [0, 1], sizes = [32, 1], strides = [1, 1]} : vector<32x8xf32> to vector<32x1xf32>
    %46 = vector.extract_strided_slice %9 {offsets = [1, 0], sizes = [1, 32], strides = [1, 1]} : vector<8x32xf32> to vector<1x32xf32>
    %47 = vector.broadcast %45 : vector<32x1xf32> to vector<32x32xf32>
    %48 = vector.broadcast %46 : vector<1x32xf32> to vector<32x32xf32>
    %49 = arith.addf %47, %48 : vector<32x32xf32>
    %cst_24 = arith.constant 0.000000e+00 : f32
    %50 = vector.broadcast %cst_24 : f32 to vector<32x32xf32>
    %51 = arith.cmpf ogt, %49, %50 : vector<32x32xf32>
    %cst_25 = arith.constant 2.000000e-01 : f32
    %52 = vector.broadcast %cst_25 : f32 to vector<32x32xf32>
    %53 = arith.mulf %52, %49 : vector<32x32xf32>
    %54 = arith.select %51, %49, %53 : vector<32x32xi1>, vector<32x32xf32>
    %cst_26 = arith.constant -1.000000e+30 : f32
    %55 = vector.broadcast %cst_26 : f32 to vector<32x32xf32>
    %56 = arith.select %2, %54, %55 : vector<32x32xi1>, vector<32x32xf32>
    %cst_27 = arith.constant dense<0xFF800000> : vector<32xf32>
    %57 = vector.multi_reduction <maximumf>, %56, %cst_27 [1] : vector<32x32xf32> to vector<32xf32>
    %58 = vector.shape_cast %57 : vector<32xf32> to vector<32x1xf32>
    %59 = vector.broadcast %58 : vector<32x1xf32> to vector<32x32xf32>
    %60 = arith.subf %56, %59 : vector<32x32xf32>
    %61 = math.exp %60 : vector<32x32xf32>
    %cst_28 = arith.constant dense<0.000000e+00> : vector<32xf32>
    %62 = vector.multi_reduction <add>, %61, %cst_28 [1] : vector<32x32xf32> to vector<32xf32>
    %63 = vector.shape_cast %62 : vector<32xf32> to vector<32x1xf32>
    %64 = vector.extract_strided_slice %5 {offsets = [0, 8], sizes = [32, 8], strides = [1, 1]} : vector<32x64xf32> to vector<32x8xf32>
    %cst_29 = arith.constant dense<0.000000e+00> : vector<32x8xf32>
    %65 = tpu.matmul %61, %64, %cst_29 {dimension_numbers = #tpu.dot_dimension_numbers<[1], [0], [0], [1], [0, 0, 1, 1], [], []>} : vector<32x32xf32>, vector<32x8xf32>, vector<32x8xf32> -> vector<32x8xf32>
    %66 = tpu.reciprocal %63 {approx = true} : vector<32x1xf32> -> vector<32x1xf32>
    %67 = vector.broadcast %66 : vector<32x1xf32> to vector<32x8xf32>
    %68 = arith.mulf %65, %67 : vector<32x8xf32>
    %69 = vector.extract_strided_slice %10 {offsets = [0, 8], sizes = [1, 8], strides = [1, 1]} : vector<1x64xf32> to vector<1x8xf32>
    %70 = vector.broadcast %69 : vector<1x8xf32> to vector<32x8xf32>
    %71 = arith.addf %68, %70 : vector<32x8xf32>
    %cst_30 = arith.constant 0.000000e+00 : f32
    %72 = vector.broadcast %cst_30 : f32 to vector<32x8xf32>
    %73 = arith.cmpf ogt, %71, %72 : vector<32x8xf32>
    %74 = math.exp %71 : vector<32x8xf32>
    %cst_31 = arith.constant 1.000000e+00 : f32
    %75 = vector.broadcast %cst_31 : f32 to vector<32x8xf32>
    %76 = arith.subf %74, %75 : vector<32x8xf32>
    %77 = arith.select %73, %71, %76 : vector<32x8xi1>, vector<32x8xf32>
    %c0_32 = arith.constant 0 : index
    %c8 = arith.constant 8 : index
    %78 = vector.load %arg15[%c0_32, %c8] : memref<32x64xf32, #tpu.memory_space<vmem>>, vector<32x8xf32>
    tpu.vector_store %arg15[%c0_32, %c8], %77 {strides = array<i32>} : memref<32x64xf32, #tpu.memory_space<vmem>>, vector<32x8xf32>,
    %79 = vector.extract_strided_slice %7 {offsets = [0, 2], sizes = [32, 1], strides = [1, 1]} : vector<32x8xf32> to vector<32x1xf32>
    %80 = vector.extract_strided_slice %9 {offsets = [2, 0], sizes = [1, 32], strides = [1, 1]} : vector<8x32xf32> to vector<1x32xf32>
    %81 = vector.broadcast %79 : vector<32x1xf32> to vector<32x32xf32>
    %82 = vector.broadcast %80 : vector<1x32xf32> to vector<32x32xf32>
    %83 = arith.addf %81, %82 : vector<32x32xf32>
    %cst_33 = arith.constant 0.000000e+00 : f32
    %84 = vector.broadcast %cst_33 : f32 to vector<32x32xf32>
    %85 = arith.cmpf ogt, %83, %84 : vector<32x32xf32>
    %cst_34 = arith.constant 2.000000e-01 : f32
    %86 = vector.broadcast %cst_34 : f32 to vector<32x32xf32>
    %87 = arith.mulf %86, %83 : vector<32x32xf32>
    %88 = arith.select %85, %83, %87 : vector<32x32xi1>, vector<32x32xf32>
    %cst_35 = arith.constant -1.000000e+30 : f32
    %89 = vector.broadcast %cst_35 : f32 to vector<32x32xf32>
    %90 = arith.select %2, %88, %89 : vector<32x32xi1>, vector<32x32xf32>
    %cst_36 = arith.constant dense<0xFF800000> : vector<32xf32>
    %91 = vector.multi_reduction <maximumf>, %90, %cst_36 [1] : vector<32x32xf32> to vector<32xf32>
    %92 = vector.shape_cast %91 : vector<32xf32> to vector<32x1xf32>
    %93 = vector.broadcast %92 : vector<32x1xf32> to vector<32x32xf32>
    %94 = arith.subf %90, %93 : vector<32x32xf32>
    %95 = math.exp %94 : vector<32x32xf32>
    %cst_37 = arith.constant dense<0.000000e+00> : vector<32xf32>
    %96 = vector.multi_reduction <add>, %95, %cst_37 [1] : vector<32x32xf32> to vector<32xf32>
    %97 = vector.shape_cast %96 : vector<32xf32> to vector<32x1xf32>
    %98 = vector.extract_strided_slice %5 {offsets = [0, 16], sizes = [32, 8], strides = [1, 1]} : vector<32x64xf32> to vector<32x8xf32>
    %cst_38 = arith.constant dense<0.000000e+00> : vector<32x8xf32>
    %99 = tpu.matmul %95, %98, %cst_38 {dimension_numbers = #tpu.dot_dimension_numbers<[1], [0], [0], [1], [0, 0, 1, 1], [], []>} : vector<32x32xf32>, vector<32x8xf32>, vector<32x8xf32> -> vector<32x8xf32>
    %100 = tpu.reciprocal %97 {approx = true} : vector<32x1xf32> -> vector<32x1xf32>
    %101 = vector.broadcast %100 : vector<32x1xf32> to vector<32x8xf32>
    %102 = arith.mulf %99, %101 : vector<32x8xf32>
    %103 = vector.extract_strided_slice %10 {offsets = [0, 16], sizes = [1, 8], strides = [1, 1]} : vector<1x64xf32> to vector<1x8xf32>
    %104 = vector.broadcast %103 : vector<1x8xf32> to vector<32x8xf32>
    %105 = arith.addf %102, %104 : vector<32x8xf32>
    %cst_39 = arith.constant 0.000000e+00 : f32
    %106 = vector.broadcast %cst_39 : f32 to vector<32x8xf32>
    %107 = arith.cmpf ogt, %105, %106 : vector<32x8xf32>
    %108 = math.exp %105 : vector<32x8xf32>
    %cst_40 = arith.constant 1.000000e+00 : f32
    %109 = vector.broadcast %cst_40 : f32 to vector<32x8xf32>
    %110 = arith.subf %108, %109 : vector<32x8xf32>
    %111 = arith.select %107, %105, %110 : vector<32x8xi1>, vector<32x8xf32>
    %c0_41 = arith.constant 0 : index
    %c16 = arith.constant 16 : index
    %112 = vector.load %arg15[%c0_41, %c16] : memref<32x64xf32, #tpu.memory_space<vmem>>, vector<32x8xf32>
    tpu.vector_store %arg15[%c0_41, %c16], %111 {strides = array<i32>} : memref<32x64xf32, #tpu.memory_space<vmem>>, vector<32x8xf32>,
    %113 = vector.extract_strided_slice %7 {offsets = [0, 3], sizes = [32, 1], strides = [1, 1]} : vector<32x8xf32> to vector<32x1xf32>
    %114 = vector.extract_strided_slice %9 {offsets = [3, 0], sizes = [1, 32], strides = [1, 1]} : vector<8x32xf32> to vector<1x32xf32>
    %115 = vector.broadcast %113 : vector<32x1xf32> to vector<32x32xf32>
    %116 = vector.broadcast %114 : vector<1x32xf32> to vector<32x32xf32>
    %117 = arith.addf %115, %116 : vector<32x32xf32>
    %cst_42 = arith.constant 0.000000e+00 : f32
    %118 = vector.broadcast %cst_42 : f32 to vector<32x32xf32>
    %119 = arith.cmpf ogt, %117, %118 : vector<32x32xf32>
    %cst_43 = arith.constant 2.000000e-01 : f32
    %120 = vector.broadcast %cst_43 : f32 to vector<32x32xf32>
    %121 = arith.mulf %120, %117 : vector<32x32xf32>
    %122 = arith.select %119, %117, %121 : vector<32x32xi1>, vector<32x32xf32>
    %cst_44 = arith.constant -1.000000e+30 : f32
    %123 = vector.broadcast %cst_44 : f32 to vector<32x32xf32>
    %124 = arith.select %2, %122, %123 : vector<32x32xi1>, vector<32x32xf32>
    %cst_45 = arith.constant dense<0xFF800000> : vector<32xf32>
    %125 = vector.multi_reduction <maximumf>, %124, %cst_45 [1] : vector<32x32xf32> to vector<32xf32>
    %126 = vector.shape_cast %125 : vector<32xf32> to vector<32x1xf32>
    %127 = vector.broadcast %126 : vector<32x1xf32> to vector<32x32xf32>
    %128 = arith.subf %124, %127 : vector<32x32xf32>
    %129 = math.exp %128 : vector<32x32xf32>
    %cst_46 = arith.constant dense<0.000000e+00> : vector<32xf32>
    %130 = vector.multi_reduction <add>, %129, %cst_46 [1] : vector<32x32xf32> to vector<32xf32>
    %131 = vector.shape_cast %130 : vector<32xf32> to vector<32x1xf32>
    %132 = vector.extract_strided_slice %5 {offsets = [0, 24], sizes = [32, 8], strides = [1, 1]} : vector<32x64xf32> to vector<32x8xf32>
    %cst_47 = arith.constant dense<0.000000e+00> : vector<32x8xf32>
    %133 = tpu.matmul %129, %132, %cst_47 {dimension_numbers = #tpu.dot_dimension_numbers<[1], [0], [0], [1], [0, 0, 1, 1], [], []>} : vector<32x32xf32>, vector<32x8xf32>, vector<32x8xf32> -> vector<32x8xf32>
    %134 = tpu.reciprocal %131 {approx = true} : vector<32x1xf32> -> vector<32x1xf32>
    %135 = vector.broadcast %134 : vector<32x1xf32> to vector<32x8xf32>
    %136 = arith.mulf %133, %135 : vector<32x8xf32>
    %137 = vector.extract_strided_slice %10 {offsets = [0, 24], sizes = [1, 8], strides = [1, 1]} : vector<1x64xf32> to vector<1x8xf32>
    %138 = vector.broadcast %137 : vector<1x8xf32> to vector<32x8xf32>
    %139 = arith.addf %136, %138 : vector<32x8xf32>
    %cst_48 = arith.constant 0.000000e+00 : f32
    %140 = vector.broadcast %cst_48 : f32 to vector<32x8xf32>
    %141 = arith.cmpf ogt, %139, %140 : vector<32x8xf32>
    %142 = math.exp %139 : vector<32x8xf32>
    %cst_49 = arith.constant 1.000000e+00 : f32
    %143 = vector.broadcast %cst_49 : f32 to vector<32x8xf32>
    %144 = arith.subf %142, %143 : vector<32x8xf32>
    %145 = arith.select %141, %139, %144 : vector<32x8xi1>, vector<32x8xf32>
    %c0_50 = arith.constant 0 : index
    %c24 = arith.constant 24 : index
    %146 = vector.load %arg15[%c0_50, %c24] : memref<32x64xf32, #tpu.memory_space<vmem>>, vector<32x8xf32>
    tpu.vector_store %arg15[%c0_50, %c24], %145 {strides = array<i32>} : memref<32x64xf32, #tpu.memory_space<vmem>>, vector<32x8xf32>,
    %147 = vector.extract_strided_slice %7 {offsets = [0, 4], sizes = [32, 1], strides = [1, 1]} : vector<32x8xf32> to vector<32x1xf32>
    %148 = vector.extract_strided_slice %9 {offsets = [4, 0], sizes = [1, 32], strides = [1, 1]} : vector<8x32xf32> to vector<1x32xf32>
    %149 = vector.broadcast %147 : vector<32x1xf32> to vector<32x32xf32>
    %150 = vector.broadcast %148 : vector<1x32xf32> to vector<32x32xf32>
    %151 = arith.addf %149, %150 : vector<32x32xf32>
    %cst_51 = arith.constant 0.000000e+00 : f32
    %152 = vector.broadcast %cst_51 : f32 to vector<32x32xf32>
    %153 = arith.cmpf ogt, %151, %152 : vector<32x32xf32>
    %cst_52 = arith.constant 2.000000e-01 : f32
    %154 = vector.broadcast %cst_52 : f32 to vector<32x32xf32>
    %155 = arith.mulf %154, %151 : vector<32x32xf32>
    %156 = arith.select %153, %151, %155 : vector<32x32xi1>, vector<32x32xf32>
    %cst_53 = arith.constant -1.000000e+30 : f32
    %157 = vector.broadcast %cst_53 : f32 to vector<32x32xf32>
    %158 = arith.select %2, %156, %157 : vector<32x32xi1>, vector<32x32xf32>
    %cst_54 = arith.constant dense<0xFF800000> : vector<32xf32>
    %159 = vector.multi_reduction <maximumf>, %158, %cst_54 [1] : vector<32x32xf32> to vector<32xf32>
    %160 = vector.shape_cast %159 : vector<32xf32> to vector<32x1xf32>
    %161 = vector.broadcast %160 : vector<32x1xf32> to vector<32x32xf32>
    %162 = arith.subf %158, %161 : vector<32x32xf32>
    %163 = math.exp %162 : vector<32x32xf32>
    %cst_55 = arith.constant dense<0.000000e+00> : vector<32xf32>
    %164 = vector.multi_reduction <add>, %163, %cst_55 [1] : vector<32x32xf32> to vector<32xf32>
    %165 = vector.shape_cast %164 : vector<32xf32> to vector<32x1xf32>
    %166 = vector.extract_strided_slice %5 {offsets = [0, 32], sizes = [32, 8], strides = [1, 1]} : vector<32x64xf32> to vector<32x8xf32>
    %cst_56 = arith.constant dense<0.000000e+00> : vector<32x8xf32>
    %167 = tpu.matmul %163, %166, %cst_56 {dimension_numbers = #tpu.dot_dimension_numbers<[1], [0], [0], [1], [0, 0, 1, 1], [], []>} : vector<32x32xf32>, vector<32x8xf32>, vector<32x8xf32> -> vector<32x8xf32>
    %168 = tpu.reciprocal %165 {approx = true} : vector<32x1xf32> -> vector<32x1xf32>
    %169 = vector.broadcast %168 : vector<32x1xf32> to vector<32x8xf32>
    %170 = arith.mulf %167, %169 : vector<32x8xf32>
    %171 = vector.extract_strided_slice %10 {offsets = [0, 32], sizes = [1, 8], strides = [1, 1]} : vector<1x64xf32> to vector<1x8xf32>
    %172 = vector.broadcast %171 : vector<1x8xf32> to vector<32x8xf32>
    %173 = arith.addf %170, %172 : vector<32x8xf32>
    %cst_57 = arith.constant 0.000000e+00 : f32
    %174 = vector.broadcast %cst_57 : f32 to vector<32x8xf32>
    %175 = arith.cmpf ogt, %173, %174 : vector<32x8xf32>
    %176 = math.exp %173 : vector<32x8xf32>
    %cst_58 = arith.constant 1.000000e+00 : f32
    %177 = vector.broadcast %cst_58 : f32 to vector<32x8xf32>
    %178 = arith.subf %176, %177 : vector<32x8xf32>
    %179 = arith.select %175, %173, %178 : vector<32x8xi1>, vector<32x8xf32>
    %c0_59 = arith.constant 0 : index
    %c32 = arith.constant 32 : index
    %180 = vector.load %arg15[%c0_59, %c32] : memref<32x64xf32, #tpu.memory_space<vmem>>, vector<32x8xf32>
    tpu.vector_store %arg15[%c0_59, %c32], %179 {strides = array<i32>} : memref<32x64xf32, #tpu.memory_space<vmem>>, vector<32x8xf32>,
    %181 = vector.extract_strided_slice %7 {offsets = [0, 5], sizes = [32, 1], strides = [1, 1]} : vector<32x8xf32> to vector<32x1xf32>
    %182 = vector.extract_strided_slice %9 {offsets = [5, 0], sizes = [1, 32], strides = [1, 1]} : vector<8x32xf32> to vector<1x32xf32>
    %183 = vector.broadcast %181 : vector<32x1xf32> to vector<32x32xf32>
    %184 = vector.broadcast %182 : vector<1x32xf32> to vector<32x32xf32>
    %185 = arith.addf %183, %184 : vector<32x32xf32>
    %cst_60 = arith.constant 0.000000e+00 : f32
    %186 = vector.broadcast %cst_60 : f32 to vector<32x32xf32>
    %187 = arith.cmpf ogt, %185, %186 : vector<32x32xf32>
    %cst_61 = arith.constant 2.000000e-01 : f32
    %188 = vector.broadcast %cst_61 : f32 to vector<32x32xf32>
    %189 = arith.mulf %188, %185 : vector<32x32xf32>
    %190 = arith.select %187, %185, %189 : vector<32x32xi1>, vector<32x32xf32>
    %cst_62 = arith.constant -1.000000e+30 : f32
    %191 = vector.broadcast %cst_62 : f32 to vector<32x32xf32>
    %192 = arith.select %2, %190, %191 : vector<32x32xi1>, vector<32x32xf32>
    %cst_63 = arith.constant dense<0xFF800000> : vector<32xf32>
    %193 = vector.multi_reduction <maximumf>, %192, %cst_63 [1] : vector<32x32xf32> to vector<32xf32>
    %194 = vector.shape_cast %193 : vector<32xf32> to vector<32x1xf32>
    %195 = vector.broadcast %194 : vector<32x1xf32> to vector<32x32xf32>
    %196 = arith.subf %192, %195 : vector<32x32xf32>
    %197 = math.exp %196 : vector<32x32xf32>
    %cst_64 = arith.constant dense<0.000000e+00> : vector<32xf32>
    %198 = vector.multi_reduction <add>, %197, %cst_64 [1] : vector<32x32xf32> to vector<32xf32>
    %199 = vector.shape_cast %198 : vector<32xf32> to vector<32x1xf32>
    %200 = vector.extract_strided_slice %5 {offsets = [0, 40], sizes = [32, 8], strides = [1, 1]} : vector<32x64xf32> to vector<32x8xf32>
    %cst_65 = arith.constant dense<0.000000e+00> : vector<32x8xf32>
    %201 = tpu.matmul %197, %200, %cst_65 {dimension_numbers = #tpu.dot_dimension_numbers<[1], [0], [0], [1], [0, 0, 1, 1], [], []>} : vector<32x32xf32>, vector<32x8xf32>, vector<32x8xf32> -> vector<32x8xf32>
    %202 = tpu.reciprocal %199 {approx = true} : vector<32x1xf32> -> vector<32x1xf32>
    %203 = vector.broadcast %202 : vector<32x1xf32> to vector<32x8xf32>
    %204 = arith.mulf %201, %203 : vector<32x8xf32>
    %205 = vector.extract_strided_slice %10 {offsets = [0, 40], sizes = [1, 8], strides = [1, 1]} : vector<1x64xf32> to vector<1x8xf32>
    %206 = vector.broadcast %205 : vector<1x8xf32> to vector<32x8xf32>
    %207 = arith.addf %204, %206 : vector<32x8xf32>
    %cst_66 = arith.constant 0.000000e+00 : f32
    %208 = vector.broadcast %cst_66 : f32 to vector<32x8xf32>
    %209 = arith.cmpf ogt, %207, %208 : vector<32x8xf32>
    %210 = math.exp %207 : vector<32x8xf32>
    %cst_67 = arith.constant 1.000000e+00 : f32
    %211 = vector.broadcast %cst_67 : f32 to vector<32x8xf32>
    %212 = arith.subf %210, %211 : vector<32x8xf32>
    %213 = arith.select %209, %207, %212 : vector<32x8xi1>, vector<32x8xf32>
    %c0_68 = arith.constant 0 : index
    %c40 = arith.constant 40 : index
    %214 = vector.load %arg15[%c0_68, %c40] : memref<32x64xf32, #tpu.memory_space<vmem>>, vector<32x8xf32>
    tpu.vector_store %arg15[%c0_68, %c40], %213 {strides = array<i32>} : memref<32x64xf32, #tpu.memory_space<vmem>>, vector<32x8xf32>,
    %215 = vector.extract_strided_slice %7 {offsets = [0, 6], sizes = [32, 1], strides = [1, 1]} : vector<32x8xf32> to vector<32x1xf32>
    %216 = vector.extract_strided_slice %9 {offsets = [6, 0], sizes = [1, 32], strides = [1, 1]} : vector<8x32xf32> to vector<1x32xf32>
    %217 = vector.broadcast %215 : vector<32x1xf32> to vector<32x32xf32>
    %218 = vector.broadcast %216 : vector<1x32xf32> to vector<32x32xf32>
    %219 = arith.addf %217, %218 : vector<32x32xf32>
    %cst_69 = arith.constant 0.000000e+00 : f32
    %220 = vector.broadcast %cst_69 : f32 to vector<32x32xf32>
    %221 = arith.cmpf ogt, %219, %220 : vector<32x32xf32>
    %cst_70 = arith.constant 2.000000e-01 : f32
    %222 = vector.broadcast %cst_70 : f32 to vector<32x32xf32>
    %223 = arith.mulf %222, %219 : vector<32x32xf32>
    %224 = arith.select %221, %219, %223 : vector<32x32xi1>, vector<32x32xf32>
    %cst_71 = arith.constant -1.000000e+30 : f32
    %225 = vector.broadcast %cst_71 : f32 to vector<32x32xf32>
    %226 = arith.select %2, %224, %225 : vector<32x32xi1>, vector<32x32xf32>
    %cst_72 = arith.constant dense<0xFF800000> : vector<32xf32>
    %227 = vector.multi_reduction <maximumf>, %226, %cst_72 [1] : vector<32x32xf32> to vector<32xf32>
    %228 = vector.shape_cast %227 : vector<32xf32> to vector<32x1xf32>
    %229 = vector.broadcast %228 : vector<32x1xf32> to vector<32x32xf32>
    %230 = arith.subf %226, %229 : vector<32x32xf32>
    %231 = math.exp %230 : vector<32x32xf32>
    %cst_73 = arith.constant dense<0.000000e+00> : vector<32xf32>
    %232 = vector.multi_reduction <add>, %231, %cst_73 [1] : vector<32x32xf32> to vector<32xf32>
    %233 = vector.shape_cast %232 : vector<32xf32> to vector<32x1xf32>
    %234 = vector.extract_strided_slice %5 {offsets = [0, 48], sizes = [32, 8], strides = [1, 1]} : vector<32x64xf32> to vector<32x8xf32>
    %cst_74 = arith.constant dense<0.000000e+00> : vector<32x8xf32>
    %235 = tpu.matmul %231, %234, %cst_74 {dimension_numbers = #tpu.dot_dimension_numbers<[1], [0], [0], [1], [0, 0, 1, 1], [], []>} : vector<32x32xf32>, vector<32x8xf32>, vector<32x8xf32> -> vector<32x8xf32>
    %236 = tpu.reciprocal %233 {approx = true} : vector<32x1xf32> -> vector<32x1xf32>
    %237 = vector.broadcast %236 : vector<32x1xf32> to vector<32x8xf32>
    %238 = arith.mulf %235, %237 : vector<32x8xf32>
    %239 = vector.extract_strided_slice %10 {offsets = [0, 48], sizes = [1, 8], strides = [1, 1]} : vector<1x64xf32> to vector<1x8xf32>
    %240 = vector.broadcast %239 : vector<1x8xf32> to vector<32x8xf32>
    %241 = arith.addf %238, %240 : vector<32x8xf32>
    %cst_75 = arith.constant 0.000000e+00 : f32
    %242 = vector.broadcast %cst_75 : f32 to vector<32x8xf32>
    %243 = arith.cmpf ogt, %241, %242 : vector<32x8xf32>
    %244 = math.exp %241 : vector<32x8xf32>
    %cst_76 = arith.constant 1.000000e+00 : f32
    %245 = vector.broadcast %cst_76 : f32 to vector<32x8xf32>
    %246 = arith.subf %244, %245 : vector<32x8xf32>
    %247 = arith.select %243, %241, %246 : vector<32x8xi1>, vector<32x8xf32>
    %c0_77 = arith.constant 0 : index
    %c48 = arith.constant 48 : index
    %248 = vector.load %arg15[%c0_77, %c48] : memref<32x64xf32, #tpu.memory_space<vmem>>, vector<32x8xf32>
    tpu.vector_store %arg15[%c0_77, %c48], %247 {strides = array<i32>} : memref<32x64xf32, #tpu.memory_space<vmem>>, vector<32x8xf32>,
    %249 = vector.extract_strided_slice %7 {offsets = [0, 7], sizes = [32, 1], strides = [1, 1]} : vector<32x8xf32> to vector<32x1xf32>
    %250 = vector.extract_strided_slice %9 {offsets = [7, 0], sizes = [1, 32], strides = [1, 1]} : vector<8x32xf32> to vector<1x32xf32>
    %251 = vector.broadcast %249 : vector<32x1xf32> to vector<32x32xf32>
    %252 = vector.broadcast %250 : vector<1x32xf32> to vector<32x32xf32>
    %253 = arith.addf %251, %252 : vector<32x32xf32>
    %cst_78 = arith.constant 0.000000e+00 : f32
    %254 = vector.broadcast %cst_78 : f32 to vector<32x32xf32>
    %255 = arith.cmpf ogt, %253, %254 : vector<32x32xf32>
    %cst_79 = arith.constant 2.000000e-01 : f32
    %256 = vector.broadcast %cst_79 : f32 to vector<32x32xf32>
    %257 = arith.mulf %256, %253 : vector<32x32xf32>
    %258 = arith.select %255, %253, %257 : vector<32x32xi1>, vector<32x32xf32>
    %cst_80 = arith.constant -1.000000e+30 : f32
    %259 = vector.broadcast %cst_80 : f32 to vector<32x32xf32>
    %260 = arith.select %2, %258, %259 : vector<32x32xi1>, vector<32x32xf32>
    %cst_81 = arith.constant dense<0xFF800000> : vector<32xf32>
    %261 = vector.multi_reduction <maximumf>, %260, %cst_81 [1] : vector<32x32xf32> to vector<32xf32>
    %262 = vector.shape_cast %261 : vector<32xf32> to vector<32x1xf32>
    %263 = vector.broadcast %262 : vector<32x1xf32> to vector<32x32xf32>
    %264 = arith.subf %260, %263 : vector<32x32xf32>
    %265 = math.exp %264 : vector<32x32xf32>
    %cst_82 = arith.constant dense<0.000000e+00> : vector<32xf32>
    %266 = vector.multi_reduction <add>, %265, %cst_82 [1] : vector<32x32xf32> to vector<32xf32>
    %267 = vector.shape_cast %266 : vector<32xf32> to vector<32x1xf32>
    %268 = vector.extract_strided_slice %5 {offsets = [0, 56], sizes = [32, 8], strides = [1, 1]} : vector<32x64xf32> to vector<32x8xf32>
    %cst_83 = arith.constant dense<0.000000e+00> : vector<32x8xf32>
    %269 = tpu.matmul %265, %268, %cst_83 {dimension_numbers = #tpu.dot_dimension_numbers<[1], [0], [0], [1], [0, 0, 1, 1], [], []>} : vector<32x32xf32>, vector<32x8xf32>, vector<32x8xf32> -> vector<32x8xf32>
    %270 = tpu.reciprocal %267 {approx = true} : vector<32x1xf32> -> vector<32x1xf32>
    %271 = vector.broadcast %270 : vector<32x1xf32> to vector<32x8xf32>
    %272 = arith.mulf %269, %271 : vector<32x8xf32>
    %273 = vector.extract_strided_slice %10 {offsets = [0, 56], sizes = [1, 8], strides = [1, 1]} : vector<1x64xf32> to vector<1x8xf32>
    %274 = vector.broadcast %273 : vector<1x8xf32> to vector<32x8xf32>
    %275 = arith.addf %272, %274 : vector<32x8xf32>
    %cst_84 = arith.constant 0.000000e+00 : f32
    %276 = vector.broadcast %cst_84 : f32 to vector<32x8xf32>
    %277 = arith.cmpf ogt, %275, %276 : vector<32x8xf32>
    %278 = math.exp %275 : vector<32x8xf32>
    %cst_85 = arith.constant 1.000000e+00 : f32
    %279 = vector.broadcast %cst_85 : f32 to vector<32x8xf32>
    %280 = arith.subf %278, %279 : vector<32x8xf32>
    %281 = arith.select %277, %275, %280 : vector<32x8xi1>, vector<32x8xf32>
    %c0_86 = arith.constant 0 : index
    %c56 = arith.constant 56 : index
    %282 = vector.load %arg15[%c0_86, %c56] : memref<32x64xf32, #tpu.memory_space<vmem>>, vector<32x8xf32>
    tpu.vector_store %arg15[%c0_86, %c56], %281 {strides = array<i32>} : memref<32x64xf32, #tpu.memory_space<vmem>>, vector<32x8xf32>,
    %c0_87 = arith.constant 0 : index
    %c0_88 = arith.constant 0 : index
    %283 = vector.load %arg15[%c0_87, %c0_88] : memref<32x64xf32, #tpu.memory_space<vmem>>, vector<32x64xf32>
    %c0_89 = arith.constant 0 : index
    %c0_90 = arith.constant 0 : index
    %284 = vector.load %arg8[%c0_89, %c0_90] : memref<64x128xf32, #tpu.memory_space<vmem>>, vector<64x128xf32>
    %cst_91 = arith.constant dense<0.000000e+00> : vector<32x128xf32>
    %285 = tpu.matmul %283, %284, %cst_91 {dimension_numbers = #tpu.dot_dimension_numbers<[1], [0], [0], [1], [0, 0, 1, 1], [], []>} : vector<32x64xf32>, vector<64x128xf32>, vector<32x128xf32> -> vector<32x128xf32>
    %c0_92 = arith.constant 0 : index
    %c0_93 = arith.constant 0 : index
    %286 = vector.load %arg10[%c0_92, %c0_93] : memref<1x128xf32, #tpu.memory_space<vmem>>, vector<1x128xf32>
    %cst_94 = arith.constant dense<0.000000e+00> : vector<32x1xf32>
    %287 = tpu.matmul %285, %286, %cst_94 {dimension_numbers = #tpu.dot_dimension_numbers<[1], [1], [0], [0], [0, 0, 1, 0], [], []>} : vector<32x128xf32>, vector<1x128xf32>, vector<32x1xf32> -> vector<32x1xf32>
    %c0_95 = arith.constant 0 : index
    %c0_96 = arith.constant 0 : index
    %288 = vector.load %arg9[%c0_95, %c0_96] : memref<1x128xf32, #tpu.memory_space<vmem>>, vector<1x128xf32>
    %cst_97 = arith.constant dense<0.000000e+00> : vector<1x32xf32>
    %289 = tpu.matmul %288, %285, %cst_97 {dimension_numbers = #tpu.dot_dimension_numbers<[1], [1], [0], [0], [0, 0, 1, 0], [], []>} : vector<1x128xf32>, vector<32x128xf32>, vector<1x32xf32> -> vector<1x32xf32>
    %290 = vector.broadcast %287 : vector<32x1xf32> to vector<32x32xf32>
    %291 = vector.broadcast %289 : vector<1x32xf32> to vector<32x32xf32>
    %292 = arith.addf %290, %291 : vector<32x32xf32>
    %cst_98 = arith.constant 0.000000e+00 : f32
    %293 = vector.broadcast %cst_98 : f32 to vector<32x32xf32>
    %294 = arith.cmpf ogt, %292, %293 : vector<32x32xf32>
    %cst_99 = arith.constant 2.000000e-01 : f32
    %295 = vector.broadcast %cst_99 : f32 to vector<32x32xf32>
    %296 = arith.mulf %295, %292 : vector<32x32xf32>
    %297 = arith.select %294, %292, %296 : vector<32x32xi1>, vector<32x32xf32>
    %cst_100 = arith.constant -1.000000e+30 : f32
    %298 = vector.broadcast %cst_100 : f32 to vector<32x32xf32>
    %299 = arith.select %2, %297, %298 : vector<32x32xi1>, vector<32x32xf32>
    %cst_101 = arith.constant dense<0xFF800000> : vector<32xf32>
    %300 = vector.multi_reduction <maximumf>, %299, %cst_101 [1] : vector<32x32xf32> to vector<32xf32>
    %301 = vector.shape_cast %300 : vector<32xf32> to vector<32x1xf32>
    %302 = vector.broadcast %301 : vector<32x1xf32> to vector<32x32xf32>
    %303 = arith.subf %299, %302 : vector<32x32xf32>
    %304 = math.exp %303 : vector<32x32xf32>
    %cst_102 = arith.constant dense<0.000000e+00> : vector<32xf32>
    %305 = vector.multi_reduction <add>, %304, %cst_102 [1] : vector<32x32xf32> to vector<32xf32>
    %306 = vector.shape_cast %305 : vector<32xf32> to vector<32x1xf32>
    %cst_103 = arith.constant dense<0.000000e+00> : vector<32x128xf32>
    %307 = tpu.matmul %304, %285, %cst_103 {dimension_numbers = #tpu.dot_dimension_numbers<[1], [0], [0], [1], [0, 0, 1, 1], [], []>} : vector<32x32xf32>, vector<32x128xf32>, vector<32x128xf32> -> vector<32x128xf32>
    %308 = tpu.reciprocal %306 {approx = true} : vector<32x1xf32> -> vector<32x1xf32>
    %309 = vector.broadcast %308 : vector<32x1xf32> to vector<32x128xf32>
    %310 = arith.mulf %307, %309 : vector<32x128xf32>
    %c0_104 = arith.constant 0 : index
    %c0_105 = arith.constant 0 : index
    %311 = vector.load %arg11[%c0_104, %c0_105] : memref<1x128xf32, #tpu.memory_space<vmem>>, vector<1x128xf32>
    %312 = vector.broadcast %311 : vector<1x128xf32> to vector<32x128xf32>
    %313 = arith.addf %310, %312 : vector<32x128xf32>
    %c0_106 = arith.constant 0 : index
    %c0_107 = arith.constant 0 : index
    %314 = vector.load %arg3[%c0_106, %c0_107] : memref<2x32xf32, #tpu.memory_space<vmem>>, vector<2x32xf32>
    %cst_108 = arith.constant dense<0.000000e+00> : vector<2x128xf32>
    %315 = tpu.matmul %314, %313, %cst_108 {dimension_numbers = #tpu.dot_dimension_numbers<[1], [0], [0], [1], [0, 0, 1, 1], [], []>} : vector<2x32xf32>, vector<32x128xf32>, vector<2x128xf32> -> vector<2x128xf32>
    %c0_109 = arith.constant 0 : index
    %c0_110 = arith.constant 0 : index
    %316 = vector.load %arg12[%c0_109, %c0_110] : memref<128x1xf32, #tpu.memory_space<vmem>>, vector<128x1xf32>
    %cst_111 = arith.constant dense<0.000000e+00> : vector<2x1xf32>
    %317 = tpu.matmul %315, %316, %cst_111 {dimension_numbers = #tpu.dot_dimension_numbers<[1], [0], [0], [1], [0, 0, 1, 1], [], []>} : vector<2x128xf32>, vector<128x1xf32>, vector<2x1xf32> -> vector<2x1xf32>
    %c0_112 = arith.constant 0 : index
    %c0_113 = arith.constant 0 : index
    %318 = vector.load %arg13[%c0_112, %c0_113] : memref<1x1xf32, #tpu.memory_space<vmem>>, vector<1x1xf32>
    %319 = vector.broadcast %318 : vector<1x1xf32> to vector<2x1xf32>
    %320 = arith.addf %317, %319 : vector<2x1xf32>
    %c0_114 = arith.constant 0 : index
    %c0_115 = arith.constant 0 : index
    %321 = vector.load %arg14[%c0_114, %c0_115] : memref<2x1xf32, #tpu.memory_space<vmem>>, vector<2x1xf32>
    tpu.vector_store %arg14[%c0_114, %c0_115], %320 {strides = array<i32>} : memref<2x1xf32, #tpu.memory_space<vmem>>, vector<2x1xf32>,
    return
  }
  func.func @transform_0(%arg0: i32) -> (i32, i32) {
    %c0_i32 = arith.constant 0 : i32
    %c0_i32_0 = arith.constant 0 : i32
    %c0_i32_1 = arith.constant 0 : i32
    return %c0_i32, %c0_i32_0 : i32, i32
  }
  func.func @transform_1(%arg0: i32) -> (i32, i32) {
    %c0_i32 = arith.constant 0 : i32
    %c0_i32_0 = arith.constant 0 : i32
    %c0_i32_1 = arith.constant 0 : i32
    return %c0_i32, %c0_i32_0 : i32, i32
  }
  func.func @transform_2(%arg0: i32) -> (i32, i32) {
    %c0_i32 = arith.constant 0 : i32
    %c0_i32_0 = arith.constant 0 : i32
    %c0_i32_1 = arith.constant 0 : i32
    return %c0_i32, %c0_i32_0 : i32, i32
  }
  func.func @transform_3(%arg0: i32) -> (i32, i32) {
    %c0_i32 = arith.constant 0 : i32
    %c0_i32_0 = arith.constant 0 : i32
    %c0_i32_1 = arith.constant 0 : i32
    return %c0_i32, %c0_i32_0 : i32, i32
  }
  func.func @transform_4(%arg0: i32) -> (i32, i32) {
    %c0_i32 = arith.constant 0 : i32
    %c0_i32_0 = arith.constant 0 : i32
    %c0_i32_1 = arith.constant 0 : i32
    return %c0_i32, %c0_i32_0 : i32, i32
  }
  func.func @transform_5(%arg0: i32) -> (i32, i32) {
    %c0_i32 = arith.constant 0 : i32
    %c0_i32_0 = arith.constant 0 : i32
    %c0_i32_1 = arith.constant 0 : i32
    return %c0_i32, %c0_i32_0 : i32, i32
  }
  func.func @transform_6(%arg0: i32) -> (i32, i32) {
    %c0_i32 = arith.constant 0 : i32
    %c0_i32_0 = arith.constant 0 : i32
    %c0_i32_1 = arith.constant 0 : i32
    return %c0_i32, %c0_i32_0 : i32, i32
  }
  func.func @transform_7(%arg0: i32) -> (i32, i32) {
    %c0_i32 = arith.constant 0 : i32
    %c0_i32_0 = arith.constant 0 : i32
    %c0_i32_1 = arith.constant 0 : i32
    return %c0_i32, %c0_i32_0 : i32, i32
  }
  func.func @transform_8(%arg0: i32) -> (i32, i32) {
    %c0_i32 = arith.constant 0 : i32
    %c0_i32_0 = arith.constant 0 : i32
    %c0_i32_1 = arith.constant 0 : i32
    return %c0_i32, %c0_i32_0 : i32, i32
  }
  func.func @transform_9(%arg0: i32) -> (i32, i32) {
    %c0_i32 = arith.constant 0 : i32
    %c0_i32_0 = arith.constant 0 : i32
    %c0_i32_1 = arith.constant 0 : i32
    return %c0_i32, %c0_i32_0 : i32, i32
  }
  func.func @transform_10(%arg0: i32) -> (i32, i32) {
    %c0_i32 = arith.constant 0 : i32
    %c0_i32_0 = arith.constant 0 : i32
    %c0_i32_1 = arith.constant 0 : i32
    return %c0_i32, %c0_i32_0 : i32, i32
  }
  func.func @transform_11(%arg0: i32) -> (i32, i32) {
    %c0_i32 = arith.constant 0 : i32
    %c0_i32_0 = arith.constant 0 : i32
    %c0_i32_1 = arith.constant 0 : i32
    return %c0_i32, %c0_i32_0 : i32, i32
  }
  func.func @transform_12(%arg0: i32) -> (i32, i32) {
    %c0_i32 = arith.constant 0 : i32
    %c0_i32_0 = arith.constant 0 : i32
    %c0_i32_1 = arith.constant 0 : i32
    return %c0_i32, %c0_i32_0 : i32, i32
  }
  func.func @transform_13(%arg0: i32) -> (i32, i32) {
    %c0_i32 = arith.constant 0 : i32
    %c0_i32_0 = arith.constant 0 : i32
    %c0_i32_1 = arith.constant 0 : i32
    return %c0_i32, %c0_i32_0 : i32, i32
  }
}

</mosaic_0001>

<bundles_post_ra>
// kernel: tpu_custom_call.1
= control target key start
LH: loop header
LB: loop body
LE: loop exit
PB: predicated region body
PF: predicated region fallthrough
CT: control target
= control target key end

     0   :  { %vm81_vm0 = vcmask 1042432   ;;  %vm68_vm1 = vcmask 613376   ;;  %vm171_vm2 = vcmask 523264   ;;  %v4812_v15 = vmov 0.0   ;;  %s3545_s20 = smov 104   ;;  %s3546_s21 = smov 120   ;;  %s4797_s3 = inlined_call_operand.vmem [shape: f32[75,64], index: 3, kind: input, shape index: {}]   ;;  %s4798_s0 = inlined_call_operand.vmem [shape: f32[32,75], index: 0, kind: input, shape index: {}]   ;;  %s4799_s5 = inlined_call_operand.vmem [shape: f32[8,64], index: 5, kind: input, shape index: {}]   ;;  %s4800_s4 = inlined_call_operand.vmem [shape: f32[8,64], index: 4, kind: input, shape index: {}]   ;;  %s4801_s1 = inlined_call_operand.vmem [shape: f32[32,32], index: 1, kind: input, shape index: {}]   ;;  %s4802_s6 = inlined_call_operand.vmem [shape: f32[1,64], index: 6, kind: input, shape index: {}]   ;;  %s4803_s7 = inlined_call_operand.vmem [shape: f32[64,128], index: 7, kind: input, shape index: {}]   ;;  %s4804_s9 = inlined_call_operand.vmem [shape: f32[1,128], index: 9, kind: input, shape index: {}]   ;;  %s4805_s8 = inlined_call_operand.vmem [shape: f32[1,128], index: 8, kind: input, shape index: {}]   ;;  %s4806_s11 = inlined_call_operand.vmem [shape: f32[128,1], index: 11, kind: input, shape index: {}]   ;;  %s4807_s10 = inlined_call_operand.vmem [shape: f32[1,128], index: 10, kind: input, shape index: {}]   ;;  %s4808_s2 = inlined_call_operand.vmem [shape: f32[2,32], index: 2, kind: input, shape index: {}]   ;;  %s4809_s12 = inlined_call_operand.<no memory space> [shape: f32[1,1], index: 12, kind: input, shape index: {}]   ;;  %s4810_s13 = inlined_call_operand.vmem [shape: f32[2,1], index: 13, kind: output, shape index: {}]  }
   0x1   :  { %v67_v0 = vld [vmem:[%s4797_s3 + $0x48] sm:$0x7]  ;;  %v66_v1 = vld [vmem:[%s4797_s3 + $0x40] sm:$0xff]  ;;  %v65_v2 = vld [vmem:[%s4797_s3 + $0x38] sm:$0xff]  ;;  %s3549_s22 = smov 72   ;;  %s3550_s23 = smov 96   ;;  %v367_v57 = vlaneseq }
   0x2   :  { %3030 = vmatprep.subr.msk.mxu0 %vm81_vm0, %v67_v0  ;;  %v54_v3 = vld [vmem:[%s4798_s0] sm:$0xff]  ;;  %v64_v4 = vld [vmem:[%s4797_s3 + $0x30] sm:$0xff]  ;;  %v63_v5 = vld [vmem:[%s4797_s3 + $0x28] sm:$0xff]  ;;  %s3551_s24 = smov 80   ;;  %vm3552_vm3 = vmmov 0   ;;  %v3553_v21 = vmov 1  }
   0x3   :  { %3031 = vmatpush3.msk.msra.mxu0 %vm81_vm0, %v67_v0  ;;  %3050 = vmatprep.mubr.msk.f32.mxu0 %vm68_vm1, %v54_v3  ;;  %v62_v6 = vld [vmem:[%s4797_s3 + $0x20] sm:$0xff]  ;;  %v61_v7 = vld [vmem:[%s4797_s3 + $0x18] sm:$0xff]  ;;  %v60_v8 = vld [vmem:[%s4797_s3 + $0x10] sm:$0xff]  ;;  %v3554_v22 = vmov 0   ;;  %v3555_v42 = vmov 2   ;;  %v3556_v43 = vmov 3  }
   0x4   :  { %3032 = vmatprep.subr.mxu0 %v66_v1  ;;  %v59_v9 = vld [vmem:[%s4797_s3 + $0x8] sm:$0xff]  ;;  %v58_v10 = vld [vmem:[%s4797_s3] sm:$0xff]  ;;  %v56_v12 = vld [vmem:[%s4798_s0 + $0x10] sm:$0xff]  ;;  %3305 = vset.pattern.permute.xlu1 %v3553_v21  ;;  %v3557_v45 = vmov 4   ;;  %v3558_v46 = vmov 5   ;;  %v3559_v48 = vmov 6  }
   0x5   :  { %3033 = vmatpush3.msra.mxu0 %v66_v1  ;;  %v55_v11 = vld [vmem:[%s4798_s0 + $0x8] sm:$0xff]  ;;  %v57_v13 = vld [vmem:[%s4798_s0 + $0x18] sm:$0xff]  ;;  %v170_v14 = vld [vmem:[%s4799_s5] sm:$0xff]  ;;  %s3547_s0 = smov 88   ;;  %s3548_s5 = smov 112   ;;  %3304 = vset.pattern.permute.xlu0 %v3554_v22  ;;  %v3560_v49 = vmov 7  }
   0x6   :  { %3034 = vmatprep.subr.mxu0 %v65_v2  ;;  %3056 = vmatprep.subr.msk.mxu1 %vm171_vm2, %v170_v14  ;;  %v272_v20 = vld [vmem:[%s4800_s4] sm:$0xff]  ;;  %v3791_v58 = vshrl.u32 %v367_v57, 7  ;;  %vm391_vm7 = vcmask 261120   ;;  %s3561_s18 = smov 8   ;;  %s3562_s3 = smov 16  }
   0x7   :  { %3035 = vmatpush3.msra.mxu0 %v65_v2  ;;  %3057 = vmatpush3.xpose.msk.msra.mxu1 %vm171_vm2, %v170_v14  ;;  %s3563_s19 = smov 24   ;;  %s3566_s30 = smov 48  }
   0x8   :  { %3036 = vmatprep.subr.mxu0 %v64_v4  ;;  %3064 = vmatprep.subr.mxu1 %v4812_v15  ;;  %4831 = vst [vmem:[#allocation10_spill] sm:$0xff] %v3791_v58  ;;  %v4811_v61 = vsub.s32 0, %v3791_v58  ;;  %v586_v62 = vsub.s32 1, %v3791_v58  ;;  %v827_v3 = vsub.s32 2, %v3791_v58  ;;  %s3567_s17 = smov 56  }
   0x9   :  { %3037 = vmatpush3.msra.mxu0 %v64_v4  ;;  %v1068_v4 = vsub.s32 3, %v3791_v58 }
   0xa   :  { %3038 = vmatprep.subr.mxu0 %v63_v5 }
   0xb   :  { %3039 = vmatpush3.msra.mxu0 %v63_v5  ;;  %v3816_v5 = vld [vmem:[%s4801_s1 + $0x8] sm:$0xff] }
   0xc   :  { %3040 = vmatprep.subr.mxu0 %v62_v6  ;;  %4834 = vst [vmem:[#allocation13_spill] sm:$0xff] %v3816_v5  ;;  %vm51_vm4 = vcmp.gt.f32.partialorder %v3816_v5, 0.0 }
   0xd   :  { %3041 = vmatpush3.msra.mxu0 %v62_v6 }
   0xe   :  { %3042 = vmatprep.subr.mxu0 %v61_v7 }
   0xf   :  { %3043 = vmatpush3.msra.mxu0 %v61_v7 }
  0x10   :  { %3044 = vmatprep.subr.mxu0 %v60_v8 }
  0x11   :  { %3045 = vmatpush3.msra.mxu0 %v60_v8 }
  0x12   :  { %3046 = vmatprep.subr.mxu0 %v59_v9 }
  0x13   :  { %3047 = vmatpush3.msra.mxu0 %v59_v9 }
  0x14   :  { %3048 = vmatprep.subr.mxu0 %v58_v10 }
  0x15   :  { %3049 = vmatpush3.msra.mxu0 %v58_v10 }
  0x16   :  { %3051 = vmatmul.mubr.msk.f32.vlgmr.msra.gmra.mxu0 %vm68_vm1, %v55_v11 }
  0x17   :  { %3053 = vmatprep.mubr.msk.f32.mxu0 %vm68_vm1, %v56_v12  ;;  %v1309_v12 = vsub.s32 4, %v3791_v58 }
  0x1a   :  { %3054 = vmatmul.mubr.msk.f32.gmra.mxu0 %vm68_vm1, %v57_v13  ;;  %v1550_v13 = vsub.s32 5, %v3791_v58 }
  0xd6   :  { %v3052_v16 = vpop.f32.mrf.mxu0 }
  0xd7   :  { %1128 = vrot.lane.b32.xlu0 %v3052_v16, %s3545_s20  ;;  %646 = vrot.lane.b32.xlu1 %v3052_v16, %s3546_s21 }
  0xd8   :  { %v3692_v17 = vpop.f32.mrf.mxu0 }
  0xd9   :  { %3058 = vmatprep.mubr.msk.f32.mxu1 %vm171_vm2, %v3692_v17 }
  0xda   :  { %v3055_v18 = vpop.f32.mrf.mxu0  ;;  %3059 = vmatmul.mubr.msk.f32.vlgmr.msra.gmra.mxu1 %vm171_vm2, %v3052_v16 }
  0xdb   :  { %1610 = vrot.lane.b32.xlu0 %v3052_v16, %s3547_s0  ;;  %887 = vrot.lane.b32.xlu1 %v3052_v16, %s3548_s5 }
  0xdc   :  { %3065 = vmatpush3.xpose.msk.msra.mxu1 %vm171_vm2, %v3055_v18  ;;  %3075 = vmatprep.subr.mxu0 %v3055_v18  ;;  %v161_v19 = vpop.f32.mrf.mxu0 }
  0xdd   :  { %3076 = vmatpush3.msra.mxu0 %v3055_v18  ;;  %3066 = vmatprep.subr.mxu1 %v4812_v15 }
  0xde   :  { %3077 = vmatprep.subr.mxu0 %v161_v19  ;;  %3061 = vmatprep.mubr.msk.f32.mxu1 %vm171_vm2, %v161_v19 }
  0xdf   :  { %3078 = vmatpush3.msra.mxu0 %v161_v19  ;;  %2092 = vrot.lane.b32.xlu0 %v3052_v16, %s3549_s22 }
  0xe0   :  { %1369 = vrot.lane.b32.xlu1 %v3052_v16, %s3550_s23  ;;  %3067 = vmatpush3.xpose.msk.msra.mxu1 %vm171_vm2, %v161_v19 }
  0xe1   :  { %3079 = vmatprep.subr.mxu0 %v3052_v16  ;;  %3068 = vmatprep.subr.mxu1 %v4812_v15 }
  0xe2   :  { %3080 = vmatpush3.msra.mxu0 %v3052_v16  ;;  %3062 = vmatmul.mubr.msk.f32.gmra.mxu1 %vm171_vm2, %v3055_v18 }
  0xe3   :  { %3081 = vmatprep.subr.mxu0 %v3692_v17  ;;  %644 = vrot.lane.b32.xlu0 %v3692_v17, %s3546_s21 }
  0xe4   :  { %3082 = vmatpush3.msra.mxu0 %v3692_v17  ;;  %1851 = vrot.lane.b32.xlu1 %v3052_v16, %s3551_s24 }
  0xe5   :  { %3069 = vmatpush3.xpose.msk.msra.mxu1 %vm171_vm2, %v3052_v16  ;;  %3072 = vmatprep.mubr.msk.f32.mxu1 %vm3552_vm3, %v4812_v15 }
  0xe6   :  { %3070 = vmatprep.subr.mxu1 %v4812_v15 }
  0xe7   :  { %1126 = vrot.lane.b32.xlu0 %v3692_v17, %s3545_s20 }
  0xe8   :  { %885 = vrot.lane.b32.xlu1 %v3692_v17, %s3548_s5 }
  0xe9   :  { %3071 = vmatpush3.xpose.msk.msra.mxu1 %vm171_vm2, %v3692_v17 }
  0xeb   :  { %1608 = vrot.lane.b32.xlu0 %v3692_v17, %s3547_s0 }
  0xec   :  { %1367 = vrot.lane.b32.xlu1 %v3692_v17, %s3550_s23  ;;  %3073 = vmatmul.mubr.msk.f32.vlgmr.msra.gmra.mxu1 %vm171_vm2, %v272_v20 }
  0xef   :  { %650 = vrot.lane.b32.xlu0 %v3055_v18, %s3546_s21 }
  0xf0   :  { %891 = vrot.lane.b32.xlu1 %v3055_v18, %s3548_s5 }
  0xf3   :  { %1132 = vrot.lane.b32.xlu0 %v3055_v18, %s3545_s20 }
  0xf4   :  { %1373 = vrot.lane.b32.xlu1 %v3055_v18, %s3550_s23 }
  0xf7   :  { %1614 = vrot.lane.b32.xlu0 %v3055_v18, %s3547_s0 }
  0xf8   :  { %1855 = vrot.lane.b32.xlu1 %v3055_v18, %s3551_s24 }
  0xfb   :  { %2096 = vrot.lane.b32.xlu0 %v3055_v18, %s3549_s22 }
  0xfc   :  { %648 = vrot.lane.b32.xlu1 %v161_v19, %s3546_s21 }
  0xff   :  { %889 = vrot.lane.b32.xlu0 %v161_v19, %s3548_s5 }
 0x100   :  { %1371 = vrot.lane.b32.xlu1 %v161_v19, %s3550_s23 }
 0x103   :  { %1130 = vrot.lane.b32.xlu0 %v161_v19, %s3545_s20 }
 0x104   :  { %1853 = vrot.lane.b32.xlu1 %v161_v19, %s3551_s24 }
 0x107   :  { %1612 = vrot.lane.b32.xlu0 %v161_v19, %s3547_s0 }
 0x10b   :  { %2094 = vrot.lane.b32.xlu0 %v161_v19, %s3549_s22 }
 0x149   :  { %v3746_v23 = vpop.permute.xlu0 %1128  ;;  %v647_v24 = vpop.permute.xlu1 %646 }
 0x14d   :  { %v3748_v25 = vpop.permute.xlu0 %1610  ;;  %v3750_v26 = vpop.permute.xlu1 %887 }
 0x14e   :  { %4825 = vst [vmem:[#allocation4_spill] sm:$0xff] %v3748_v25 }
 0x151   :  { %v3752_v27 = vpop.permute.xlu0 %2092 }
 0x152   :  { %4826 = vst [vmem:[#allocation5_spill] sm:$0xff] %v3752_v27  ;;  %v3754_v28 = vpop.permute.xlu1 %1369 }
 0x155   :  { %v645_v29 = vpop.permute.xlu0 %644 }
 0x156   :  { %v3756_v30 = vpop.permute.xlu1 %1851 }
 0x157   :  { %4827 = vst [vmem:[#allocation6_spill] sm:$0xff] %v3756_v30 }
 0x159   :  { %v3758_v31 = vpop.permute.xlu0 %1126 }
 0x15a   :  { %v3760_v32 = vpop.permute.xlu1 %885 }
 0x15d   :  { %v3762_v33 = vpop.permute.xlu0 %1608 }
 0x15e   :  { %4828 = vst [vmem:[#allocation7_spill] sm:$0xff] %v3762_v33  ;;  %v3764_v34 = vpop.permute.xlu1 %1367 }
 0x161   :  { %v651_v35 = vpop.permute.xlu0 %650 }
 0x162   :  { %v3766_v36 = vpop.permute.xlu1 %891  ;;  %3089 = vmatprep.subr.mxu1 %v651_v35 }
 0x163   :  { %3090 = vmatpush3.msra.mxu1 %v651_v35  ;;  %3103 = vmatprep.subr.mxu0 %v3766_v36 }
 0x165   :  { %v3773_v40 = vpop.permute.xlu0 %1132 }
 0x166   :  { %v3769_v37 = vpop.permute.xlu1 %1373 }
 0x169   :  { %v3783_v53 = vpop.permute.xlu0 %1614 }
 0x16a   :  { %v3771_v38 = vpop.permute.xlu1 %1855 }
 0x16b   :  { %4829 = vst [vmem:[#allocation8_spill] sm:$0xff] %v3771_v38 }
 0x16d   :  { %v3785_v54 = vpop.permute.xlu0 %2096 }
 0x16e   :  { %v649_v39 = vpop.permute.xlu1 %648  ;;  %4830 = vst [vmem:[#allocation9_spill] sm:$0xff] %v3785_v54 }
 0x16f   :  { %3091 = vmatprep.subr.mxu1 %v649_v39 }
 0x170   :  { %3092 = vmatpush3.msra.mxu1 %v649_v39 }
 0x171   :  { %3093 = vmatprep.subr.mxu1 %v647_v24  ;;  %v3787_v55 = vpop.permute.xlu0 %889 }
 0x172   :  { %3094 = vmatpush3.msra.mxu1 %v647_v24  ;;  %v3795_v60 = vpop.permute.xlu1 %1371  ;;  %v2032_v24 = vsub.s32 7, %v3791_v58 }
 0x173   :  { %3095 = vmatprep.subr.mxu1 %v645_v29 }
 0x174   :  { %3096 = vmatpush3.msra.mxu1 %v645_v29 }
 0x175   :  { %3117 = vmatprep.subr.mxu1 %v3773_v40  ;;  %v3789_v56 = vpop.permute.xlu0 %1130 }
 0x176   :  { %v3801_v0 = vpop.permute.xlu1 %1853 }
 0x177   :  { %4833 = vst [vmem:[#allocation12_spill] sm:$0xff] %v3801_v0 }
 0x179   :  { %v3793_v59 = vpop.permute.xlu0 %1612 }
 0x17d   :  { %v3799_v63 = vpop.permute.xlu0 %2094 }
 0x17e   :  { %4832 = vst [vmem:[#allocation11_spill] sm:$0xff] %v3799_v63 }
 0x19a   :  { %v3060_v41 = vpop.f32.mrf.mxu1 }
 0x19b   :  { %354 = vperm.xlu0 %3304, %v3060_v41   ;;  %573 = vperm.xlu1 %3305, %v3060_v41  }
 0x19c   :  { %v253_v44 = vpop.f32.mrf.mxu1 }
 0x19f   :  { %3306 = vset.pattern.permute.xlu0 %v3555_v42  ;;  %3307 = vset.pattern.permute.xlu1 %v3556_v43 }
 0x1a0   :  { %814 = vperm.xlu0 %3306, %v3060_v41   ;;  %1055 = vperm.xlu1 %3307, %v3060_v41  }
 0x1a2   :  { %v3063_v47 = vpop.f32.mrf.mxu1 }
 0x1a4   :  { %3308 = vset.pattern.permute.xlu0 %v3557_v45  ;;  %3309 = vset.pattern.permute.xlu1 %v3558_v46  ;;  %v263_v50 = vpop.f32.mrf.mxu1 }
 0x1a5   :  { %1296 = vperm.xlu0 %3308, %v3060_v41   ;;  %1537 = vperm.xlu1 %3309, %v3060_v41  }
 0x1a9   :  { %3310 = vset.pattern.permute.xlu0 %v3559_v48  ;;  %3311 = vset.pattern.permute.xlu1 %v3560_v49 }
 0x1aa   :  { %1778 = vperm.xlu0 %3310, %v3060_v41   ;;  %2019 = vperm.xlu1 %3311, %v3060_v41  }
 0x1ac   :  { %v3776_v51 = vpop.f32.mrf.mxu1 }
 0x1ad   :  { %v3806_v1 = vrot.slane %v3776_v51, %v4811_v61  ;;  %v3809_v2 = vrot.slane %v3776_v51, %v586_v62  ;;  %v3822_v10 = vrot.slane %v3776_v51, %v827_v3  ;;  %v3825_v11 = vrot.slane %v3776_v51, %v1068_v4 }
 0x1ae   :  { %3312 = vset.pattern.permute.xlu0 %v3554_v22  ;;  %3313 = vset.pattern.permute.xlu1 %v3553_v21  ;;  %v3074_v52 = vpop.f32.mrf.mxu1 }
 0x1af   :  { %349 = vperm.xlu0 %3312, %v253_v44   ;;  %569 = vperm.xlu1 %3313, %v253_v44  }
 0x1b3   :  { %3314 = vset.pattern.permute.xlu1 %v3555_v42  ;;  %359 = vperm.xlu0 %3312, %v263_v50  }
 0x1b4   :  { %810 = vperm.xlu1 %3314, %v253_v44  }
 0x1b7   :  { %3328 = vset.pattern.permute.xlu0 %v3553_v21 }
 0x1b8   :  { %3315 = vset.pattern.permute.xlu1 %v3556_v43  ;;  %577 = vperm.xlu0 %3328, %v263_v50  }
 0x1b9   :  { %1051 = vperm.xlu1 %3315, %v253_v44  }
 0x1bc   :  { %3329 = vset.pattern.permute.xlu0 %v3555_v42 }
 0x1bd   :  { %3316 = vset.pattern.permute.xlu1 %v3557_v45  ;;  %818 = vperm.xlu0 %3329, %v263_v50  }
 0x1be   :  { %1292 = vperm.xlu1 %3316, %v253_v44  }
 0x1c1   :  { %3330 = vset.pattern.permute.xlu0 %v3556_v43 }
 0x1c2   :  { %3317 = vset.pattern.permute.xlu1 %v3558_v46  ;;  %1059 = vperm.xlu0 %3330, %v263_v50  }
 0x1c3   :  { %1533 = vperm.xlu1 %3317, %v253_v44  }
 0x1c6   :  { %3331 = vset.pattern.permute.xlu0 %v3557_v45 }
 0x1c7   :  { %3318 = vset.pattern.permute.xlu1 %v3559_v48  ;;  %1300 = vperm.xlu0 %3331, %v263_v50  }
 0x1c8   :  { %1774 = vperm.xlu1 %3318, %v253_v44  }
 0x1cb   :  { %3332 = vset.pattern.permute.xlu0 %v3558_v46 }
 0x1cc   :  { %3319 = vset.pattern.permute.xlu1 %v3560_v49  ;;  %1541 = vperm.xlu0 %3332, %v263_v50  }
 0x1cd   :  { %2015 = vperm.xlu1 %3319, %v253_v44   ;;  %v3846_v44 = vrot.slane %v3776_v51, %v1309_v12 }
 0x1d0   :  { %3333 = vset.pattern.permute.xlu0 %v3559_v48 }
 0x1d1   :  { %3320 = vset.pattern.permute.xlu1 %v3554_v22  ;;  %1782 = vperm.xlu0 %3333, %v263_v50   ;;  %v1791_v22 = vsub.s32 6, %v3791_v58 }
 0x1d2   :  { %364 = vperm.xlu1 %3320, %v3063_v47  }
 0x1d5   :  { %3334 = vset.pattern.permute.xlu0 %v3560_v49 }
 0x1d6   :  { %3321 = vset.pattern.permute.xlu1 %v3553_v21  ;;  %2023 = vperm.xlu0 %3334, %v263_v50  }
 0x1d7   :  { %581 = vperm.xlu1 %3321, %v3063_v47  }
 0x1db   :  { %3322 = vset.pattern.permute.xlu1 %v3555_v42 }
 0x1dc   :  { %822 = vperm.xlu1 %3322, %v3063_v47  }
 0x1e0   :  { %3323 = vset.pattern.permute.xlu1 %v3556_v43 }
 0x1e1   :  { %1063 = vperm.xlu1 %3323, %v3063_v47  }
 0x1e5   :  { %3324 = vset.pattern.permute.xlu1 %v3557_v45  ;;  %v3849_v45 = vrot.slane %v3776_v51, %v1550_v13 }
 0x1e6   :  { %1304 = vperm.xlu1 %3324, %v3063_v47  }
 0x1ea   :  { %3325 = vset.pattern.permute.xlu1 %v3558_v46 }
 0x1eb   :  { %1545 = vperm.xlu1 %3325, %v3063_v47  }
 0x1ef   :  { %3326 = vset.pattern.permute.xlu1 %v3559_v48 }
 0x1f0   :  { %1786 = vperm.xlu1 %3326, %v3063_v47  }
 0x1f4   :  { %3327 = vset.pattern.permute.xlu1 %v3560_v49 }
 0x1f5   :  { %2027 = vperm.xlu1 %3327, %v3063_v47  }
 0x216   :  { %v355_v6 = vpop.permute.xlu0 %354  ;;  %v574_v7 = vpop.permute.xlu1 %573 }
 0x217   :  { %v372_v8 = vadd.f32 %v3806_v1, %v355_v6  ;;  %v589_v9 = vadd.f32 %v3809_v2, %v574_v7  ;;  %v3860_v6 = vrot.slane %v3776_v51, %v1791_v22  ;;  %v3863_v7 = vrot.slane %v3776_v51, %v2032_v24 }
 0x219   :  { %v380_v14 = vmul.f32 0.2, %v372_v8  ;;  %v597_v16 = vmul.f32 0.2, %v589_v9  ;;  %vm593_vm5 = vcmp.gt.f32.partialorder %v589_v9, 0.0  ;;  %vm376_vm6 = vcmp.gt.f32.partialorder %v372_v8, 0.0 }
 0x21b   :  { %v815_v18 = vpop.permute.xlu0 %814  ;;  %v1056_v19 = vpop.permute.xlu1 %1055  ;;  %v601_v20 = vsel %vm593_vm5, %v589_v9, %v597_v16  ;;  %v384_v21 = vsel %vm376_vm6, %v372_v8, %v380_v14 }
 0x21c   :  { %v830_v29 = vadd.f32 %v3822_v10, %v815_v18  ;;  %v1071_v35 = vadd.f32 %v3825_v11, %v1056_v19  ;;  %v3835_v39 = vsel %vm51_vm4, %v601_v20, -1e+30  ;;  %v3839_v41 = vsel %vm51_vm4, %v384_v21, -1e+30 }
 0x21d   :  { %v611_v42 = vsel %vm391_vm7, %v3835_v39, -inf  ;;  %v395_v43 = vsel %vm391_vm7, %v3839_v41, -inf }
 0x21e   :  { %v838_v46 = vmul.f32 0.2, %v830_v29  ;;  %v1079_v47 = vmul.f32 0.2, %v1071_v35  ;;  %612 = vmax.xlane.f32.xlu1 %v611_v42  ;;  %396 = vmax.xlane.f32.xlu0 %v395_v43  ;;  %vm834_vm8 = vcmp.gt.f32.partialorder %v830_v29, 0.0  ;;  %vm1075_vm9 = vcmp.gt.f32.partialorder %v1071_v35, 0.0 }
 0x220   :  { %v1297_v48 = vpop.permute.xlu0 %1296  ;;  %v1538_v49 = vpop.permute.xlu1 %1537  ;;  %v842_v50 = vsel %vm834_vm8, %v830_v29, %v838_v46  ;;  %v1083_v52 = vsel %vm1075_vm9, %v1071_v35, %v1079_v47  ;;  %v3880_v29 = vld [vmem:[%s4801_s1] sm:$0xff] }
 0x221   :  { %v1312_v57 = vadd.f32 %v3846_v44, %v1297_v48  ;;  %v1553_v62 = vadd.f32 %v3849_v45, %v1538_v49  ;;  %v3855_v3 = vsel %vm51_vm4, %v842_v50, -1e+30  ;;  %v3867_v9 = vsel %vm51_vm4, %v1083_v52, -1e+30  ;;  %4835 = vst [vmem:[#allocation14_spill] sm:$0xff] %v3880_v29 }
 0x222   :  { %v852_v4 = vsel %vm391_vm7, %v3855_v3, -inf  ;;  %v1093_v51 = vsel %vm391_vm7, %v3867_v9, -inf  ;;  %vm50_vm14 = vcmp.gt.f32.partialorder %v3880_v29, 0.0 }
 0x223   :  { %v1320_v8 = vmul.f32 0.2, %v1312_v57  ;;  %853 = vmax.xlane.f32.xlu1 %v852_v4  ;;  %vm1316_vm10 = vcmp.gt.f32.partialorder %v1312_v57, 0.0  ;;  %v1561_v12 = vmul.f32 0.2, %v1553_v62  ;;  %vm1557_vm11 = vcmp.gt.f32.partialorder %v1553_v62, 0.0 }
 0x225   :  { %v1779_v13 = vpop.permute.xlu0 %1778  ;;  %v2020_v14 = vpop.permute.xlu1 %2019  ;;  %v1324_v16 = vsel %vm1316_vm10, %v1312_v57, %v1320_v8  ;;  %v1565_v24 = vsel %vm1557_vm11, %v1553_v62, %v1561_v12 }
 0x226   :  { %v1794_v18 = vadd.f32 %v3860_v6, %v1779_v13  ;;  %v2035_v19 = vadd.f32 %v3863_v7, %v2020_v14  ;;  %v3875_v20 = vsel %vm51_vm4, %v1324_v16, -1e+30  ;;  %v3892_v50 = vsel %vm51_vm4, %v1565_v24, -1e+30 }
 0x227   :  { %1094 = vmax.xlane.f32.xlu1 %v1093_v51  ;;  %v1334_v43 = vsel %vm391_vm7, %v3875_v20, -inf  ;;  %v1575_v8 = vsel %vm391_vm7, %v3892_v50, -inf }
 0x228   :  { %v1802_v21 = vmul.f32 0.2, %v1794_v18  ;;  %v2043_v22 = vmul.f32 0.2, %v2035_v19  ;;  %vm2039_vm12 = vcmp.gt.f32.partialorder %v2035_v19, 0.0  ;;  %vm1798_vm13 = vcmp.gt.f32.partialorder %v1794_v18, 0.0 }
 0x22a   :  { %v350_v35 = vpop.permute.xlu0 %349  ;;  %v570_v42 = vpop.permute.xlu1 %569  ;;  %v2047_v46 = vsel %vm2039_vm12, %v2035_v19, %v2043_v22  ;;  %v1806_v57 = vsel %vm1798_vm13, %v1794_v18, %v1802_v21 }
 0x22b   :  { %v371_v47 = vadd.f32 %v3806_v1, %v350_v35  ;;  %v588_v48 = vadd.f32 %v3809_v2, %v570_v42  ;;  %1335 = vmax.xlane.f32.xlu1 %v1334_v43  ;;  %v3888_v49 = vsel %vm51_vm4, %v2047_v46, -1e+30  ;;  %v3901_v14 = vsel %vm51_vm4, %v1806_v57, -1e+30 }
 0x22c   :  { %v2057_v52 = vsel %vm391_vm7, %v3888_v49, -inf  ;;  %v1816_v22 = vsel %vm391_vm7, %v3901_v14, -inf }
 0x22d   :  { %v379_v62 = vmul.f32 0.2, %v371_v47  ;;  %v596_v4 = vmul.f32 0.2, %v588_v48  ;;  %2058 = vmax.xlane.f32.xlu0 %v2057_v52  ;;  %vm592_vm15 = vcmp.gt.f32.partialorder %v588_v48, 0.0  ;;  %vm375_vm0 = vcmp.gt.f32.partialorder %v371_v47, 0.0 }
 0x22f   :  { %v811_v12 = vpop.permute.xlu1 %810  ;;  %1576 = vmax.xlane.f32.xlu1 %v1575_v8  ;;  %v600_v13 = vsel %vm592_vm15, %v588_v48, %v596_v4  ;;  %v383_v19 = vsel %vm375_vm0, %v371_v47, %v379_v62 }
 0x230   :  { %v829_v16 = vadd.f32 %v3822_v10, %v811_v12  ;;  %v3906_v18 = vsel %vm50_vm14, %v600_v13, -1e+30  ;;  %v3914_v24 = vsel %vm50_vm14, %v383_v19, -1e+30 }
 0x231   :  { %v608_v51 = vsel %vm391_vm7, %v3906_v18, -inf  ;;  %v392_v48 = vsel %vm391_vm7, %v3914_v24, -inf }
 0x232   :  { %v837_v21 = vmul.f32 0.2, %v829_v16  ;;  %609 = vmax.xlane.f32.xlu0 %v608_v51  ;;  %vm833_vm1 = vcmp.gt.f32.partialorder %v829_v16, 0.0 }
 0x233   :  { %1817 = vmax.xlane.f32.xlu1 %v1816_v22 }
 0x234   :  { %v1052_v35 = vpop.permute.xlu1 %1051  ;;  %v841_v42 = vsel %vm833_vm1, %v829_v16, %v837_v21 }
 0x235   :  { %v1070_v43 = vadd.f32 %v3825_v11, %v1052_v35  ;;  %v3919_v46 = vsel %vm50_vm14, %v841_v42, -1e+30 }
 0x236   :  { %v849_v47 = vsel %vm391_vm7, %v3919_v46, -inf }
 0x237   :  { %v1078_v52 = vmul.f32 0.2, %v1070_v43  ;;  %850 = vmax.xlane.f32.xlu0 %v849_v47  ;;  %393 = vmax.xlane.f32.xlu1 %v392_v48  ;;  %vm1074_vm5 = vcmp.gt.f32.partialorder %v1070_v43, 0.0 }
 0x239   :  { %v1293_v57 = vpop.permute.xlu1 %1292  ;;  %v1082_v62 = vsel %vm1074_vm5, %v1070_v43, %v1078_v52 }
 0x23a   :  { %v1311_v4 = vadd.f32 %v3846_v44, %v1293_v57  ;;  %v3928_v8 = vsel %vm50_vm14, %v1082_v62, -1e+30  ;;  %v3946_v57 = vpop.permute.xlu0 %359 }
 0x23b   :  { %v1090_v12 = vsel %vm391_vm7, %v3928_v8, -inf }
 0x23c   :  { %v1319_v13 = vmul.f32 0.2, %v1311_v4  ;;  %1091 = vmax.xlane.f32.xlu0 %v1090_v12  ;;  %vm1315_vm6 = vcmp.gt.f32.partialorder %v1311_v4, 0.0 }
 0x23e   :  { %v1534_v16 = vpop.permute.xlu1 %1533  ;;  %v1323_v19 = vsel %vm1315_vm6, %v1311_v4, %v1319_v13 }
 0x23f   :  { %v1552_v51 = vadd.f32 %v3849_v45, %v1534_v16  ;;  %v3935_v21 = vsel %vm50_vm14, %v1323_v19, -1e+30 }
 0x240   :  { %v1331_v22 = vsel %vm391_vm7, %v3935_v21, -inf }
 0x241   :  { %v1560_v35 = vmul.f32 0.2, %v1552_v51  ;;  %1332 = vmax.xlane.f32.xlu0 %v1331_v22  ;;  %vm1556_vm8 = vcmp.gt.f32.partialorder %v1552_v51, 0.0  ;;  %v578_v22 = vpop.permute.xlu0 %577 }
 0x243   :  { %v1775_v42 = vpop.permute.xlu1 %1774  ;;  %v1564_v43 = vsel %vm1556_vm8, %v1552_v51, %v1560_v35 }
 0x244   :  { %v1793_v47 = vadd.f32 %v3860_v6, %v1775_v42  ;;  %v3942_v48 = vsel %vm50_vm14, %v1564_v43, -1e+30  ;;  %v3958_v43 = vld [vmem:[%s4801_s1 + $0x18] sm:$0xff] }
 0x245   :  { %v1572_v52 = vsel %vm391_vm7, %v3942_v48, -inf  ;;  %vm53_vm11 = vcmp.gt.f32.partialorder %v3958_v43, 0.0 }
 0x246   :  { %v1801_v62 = vmul.f32 0.2, %v1793_v47  ;;  %1573 = vmax.xlane.f32.xlu0 %v1572_v52  ;;  %vm1797_vm9 = vcmp.gt.f32.partialorder %v1793_v47, 0.0 }
 0x248   :  { %v2016_v4 = vpop.permute.xlu1 %2015  ;;  %v1805_v12 = vsel %vm1797_vm9, %v1793_v47, %v1801_v62 }
 0x249   :  { %v2034_v13 = vadd.f32 %v3863_v7, %v2016_v4  ;;  %v3951_v16 = vsel %vm50_vm14, %v1805_v12, -1e+30  ;;  %v819_v12 = vpop.permute.xlu0 %818 }
 0x24a   :  { %v1813_v19 = vsel %vm391_vm7, %v3951_v16, -inf }
 0x24b   :  { %v2042_v51 = vmul.f32 0.2, %v2034_v13  ;;  %1814 = vmax.xlane.f32.xlu1 %v1813_v19  ;;  %vm2038_vm10 = vcmp.gt.f32.partialorder %v2034_v13, 0.0 }
 0x24d   :  { %v365_v35 = vpop.permute.xlu1 %364  ;;  %v2046_v42 = vsel %vm2038_vm10, %v2034_v13, %v2042_v51  ;;  %v3975_v5 = vpop.permute.xlu0 %1059 }
 0x24e   :  { %v374_v47 = vadd.f32 %v3806_v1, %v365_v35  ;;  %v3963_v52 = vsel %vm50_vm14, %v2046_v42, -1e+30 }
 0x24f   :  { %v2054_v62 = vsel %vm391_vm7, %v3963_v52, -inf }
 0x250   :  { %v382_v4 = vmul.f32 0.2, %v374_v47  ;;  %2055 = vmax.xlane.f32.xlu1 %v2054_v62  ;;  %vm378_vm12 = vcmp.gt.f32.partialorder %v374_v47, 0.0 }
 0x252   :  { %v582_v13 = vpop.permute.xlu1 %581  ;;  %v386_v19 = vsel %vm378_vm12, %v374_v47, %v382_v4 }
 0x253   :  { %v591_v51 = vadd.f32 %v3809_v2, %v582_v13  ;;  %v3971_v35 = vsel %vm53_vm11, %v386_v19, -1e+30 }
 0x254   :  { %v401_v42 = vsel %vm391_vm7, %v3971_v35, -inf }
 0x255   :  { %v599_v61 = vmul.f32 0.2, %v591_v51  ;;  %402 = vmax.xlane.f32.xlu1 %v401_v42  ;;  %vm595_vm13 = vcmp.gt.f32.partialorder %v591_v51, 0.0 }
 0x257   :  { %v823_v15 = vpop.permute.xlu1 %822  ;;  %v603_v62 = vsel %vm595_vm13, %v591_v51, %v599_v61  ;;  %v3989_v51 = vpop.permute.xlu0 %1300 }
 0x258   :  { %v832_v29 = vadd.f32 %v3822_v10, %v823_v15  ;;  %v3980_v47 = vsel %vm53_vm11, %v603_v62, -1e+30 }
 0x259   :  { %v617_v4 = vsel %vm391_vm7, %v3980_v47, -inf }
 0x25a   :  { %v840_v13 = vmul.f32 0.2, %v832_v29  ;;  %618 = vmax.xlane.f32.xlu1 %v617_v4  ;;  %vm836_vm15 = vcmp.gt.f32.partialorder %v832_v29, 0.0 }
 0x25c   :  { %v1064_v19 = vpop.permute.xlu1 %1063  ;;  %v844_v58 = vsel %vm836_vm15, %v832_v29, %v840_v13  ;;  %v4000_v13 = vpop.permute.xlu0 %1541 }
 0x25d   :  { %v1073_v42 = vadd.f32 %v3825_v11, %v1064_v19  ;;  %v3987_v61 = vsel %vm53_vm11, %v844_v58, -1e+30 }
 0x25e   :  { %v858_v15 = vsel %vm391_vm7, %v3987_v61, -inf }
 0x25f   :  { %v1081_v62 = vmul.f32 0.2, %v1073_v42  ;;  %859 = vmax.xlane.f32.xlu1 %v858_v15  ;;  %vm1077_vm0 = vcmp.gt.f32.partialorder %v1073_v42, 0.0 }
 0x260   :  { %v1783_v0 = vpop.permute.xlu0 %1782 }
 0x261   :  { %v1305_v27 = vpop.permute.xlu1 %1304  ;;  %v1085_v63 = vsel %vm1077_vm0, %v1073_v42, %v1081_v62 }
 0x262   :  { %v1314_v4 = vadd.f32 %v3846_v44, %v1305_v27  ;;  %v3996_v29 = vsel %vm53_vm11, %v1085_v63, -1e+30  ;;  %v373_v27 = vadd.f32 %v3806_v1, %v3946_v57  ;;  %v4020_v1 = vld [vmem:[%s4801_s1 + $0x10] sm:$0xff]  ;;  %v1795_v57 = vadd.f32 %v3860_v6, %v1783_v0 }
 0x263   :  { %v1099_v58 = vsel %vm391_vm7, %v3996_v29, -inf  ;;  %vm52_vm9 = vcmp.gt.f32.partialorder %v4020_v1, 0.0 }
 0x264   :  { %v1322_v19 = vmul.f32 0.2, %v1314_v4  ;;  %1100 = vmax.xlane.f32.xlu1 %v1099_v58  ;;  %vm1318_vm1 = vcmp.gt.f32.partialorder %v1314_v4, 0.0  ;;  %v381_v38 = vmul.f32 0.2, %v373_v27  ;;  %vm377_vm6 = vcmp.gt.f32.partialorder %v373_v27, 0.0 }
 0x265   :  { %vm1799_vm12 = vcmp.gt.f32.partialorder %v1795_v57, 0.0 }
 0x266   :  { %v1546_v54 = vpop.permute.xlu1 %1545  ;;  %v1326_v30 = vsel %vm1318_vm1, %v1314_v4, %v1322_v19  ;;  %v590_v4 = vadd.f32 %v3809_v2, %v578_v22 }
 0x267   :  { %v1555_v15 = vadd.f32 %v3849_v45, %v1546_v54  ;;  %v4005_v42 = vsel %vm53_vm11, %v1326_v30, -1e+30 }
 0x268   :  { %v1340_v63 = vsel %vm391_vm7, %v4005_v42, -inf  ;;  %v598_v2 = vmul.f32 0.2, %v590_v4  ;;  %vm594_vm10 = vcmp.gt.f32.partialorder %v590_v4, 0.0 }
 0x269   :  { %v1563_v62 = vmul.f32 0.2, %v1555_v15  ;;  %1341 = vmax.xlane.f32.xlu1 %v1340_v63  ;;  %vm1559_vm5 = vcmp.gt.f32.partialorder %v1555_v15, 0.0 }
 0x26b   :  { %v1787_v58 = vpop.permute.xlu1 %1786  ;;  %v1567_v33 = vsel %vm1559_vm5, %v1555_v15, %v1563_v62  ;;  %v385_v62 = vsel %vm377_vm6, %v373_v27, %v381_v38  ;;  %v602_v27 = vsel %vm594_vm10, %v590_v4, %v598_v2 }
 0x26c   :  { %v1796_v54 = vadd.f32 %v3860_v6, %v1787_v58  ;;  %v4015_v30 = vsel %vm53_vm11, %v1567_v33, -1e+30  ;;  %v831_v33 = vadd.f32 %v3822_v10, %v819_v12  ;;  %v1803_v58 = vmul.f32 0.2, %v1795_v57 }
 0x26d   :  { %v1581_v19 = vsel %vm391_vm7, %v4015_v30, -inf  ;;  %v4036_v10 = vsel %vm52_vm9, %v385_v62, -1e+30  ;;  %v1072_v12 = vadd.f32 %v3825_v11, %v3975_v5 }
 0x26e   :  { %v1804_v15 = vmul.f32 0.2, %v1796_v54  ;;  %1582 = vmax.xlane.f32.xlu1 %v1581_v19  ;;  %vm1800_vm8 = vcmp.gt.f32.partialorder %v1796_v54, 0.0  ;;  %v839_v38 = vmul.f32 0.2, %v831_v33  ;;  %vm835_vm15 = vcmp.gt.f32.partialorder %v831_v33, 0.0 }
 0x26f   :  { %v1080_v5 = vmul.f32 0.2, %v1072_v12  ;;  %vm1076_vm0 = vcmp.gt.f32.partialorder %v1072_v12, 0.0 }
 0x270   :  { %v2028_v22 = vpop.permute.xlu1 %2027  ;;  %v1808_v63 = vsel %vm1800_vm8, %v1796_v54, %v1804_v15  ;;  %v1807_v15 = vsel %vm1799_vm12, %v1795_v57, %v1803_v58  ;;  %v843_v4 = vsel %vm835_vm15, %v831_v33, %v839_v38 }
 0x271   :  { %v2037_v25 = vadd.f32 %v3863_v7, %v2028_v22  ;;  %v4030_v0 = vsel %vm53_vm11, %v1808_v63, -1e+30  ;;  %v398_v22 = vsel %vm391_vm7, %v4036_v10, -inf  ;;  %v4056_v11 = vsel %vm52_vm9, %v1807_v15, -1e+30 }
 0x272   :  { %v1822_v6 = vsel %vm391_vm7, %v4030_v0, -inf  ;;  %v1819_v2 = vsel %vm391_vm7, %v4056_v11, -inf  ;;  %v4064_v58 = vsel %vm52_vm9, %v843_v4, -1e+30 }
 0x273   :  { %v2045_v19 = vmul.f32 0.2, %v2037_v25  ;;  %1823 = vmax.xlane.f32.xlu0 %v1822_v6  ;;  %vm2041_vm13 = vcmp.gt.f32.partialorder %v2037_v25, 0.0  ;;  %v4050_v6 = vsel %vm52_vm9, %v602_v27, -1e+30  ;;  %v2024_v27 = vpop.permute.xlu0 %2023  ;;  %v855_v33 = vsel %vm391_vm7, %v4064_v58, -inf }
 0x274   :  { %v614_v57 = vsel %vm391_vm7, %v4050_v6, -inf  ;;  %v2036_v15 = vadd.f32 %v3863_v7, %v2024_v27 }
 0x275   :  { %v2049_v54 = vsel %vm2041_vm13, %v2037_v25, %v2045_v19  ;;  %v1313_v25 = vadd.f32 %v3846_v44, %v3989_v51  ;;  %v1554_v44 = vadd.f32 %v3849_v45, %v4000_v13  ;;  %v1084_v51 = vsel %vm1076_vm0, %v1072_v12, %v1080_v5 }
 0x276   :  { %v4044_v63 = vsel %vm53_vm11, %v2049_v54, -1e+30  ;;  %v4072_v38 = vsel %vm52_vm9, %v1084_v51, -1e+30  ;;  %v2044_v12 = vmul.f32 0.2, %v2036_v15 }
 0x277   :  { %399 = vmax.xlane.f32.xlu0 %v398_v22  ;;  %v2063_v62 = vsel %vm391_vm7, %v4044_v63, -inf  ;;  %v1321_v19 = vmul.f32 0.2, %v1313_v25  ;;  %vm1317_vm1 = vcmp.gt.f32.partialorder %v1313_v25, 0.0  ;;  %v1562_v54 = vmul.f32 0.2, %v1554_v44 }
 0x278   :  { %2064 = vmax.xlane.f32.xlu1 %v2063_v62  ;;  %vm1558_vm5 = vcmp.gt.f32.partialorder %v1554_v44, 0.0  ;;  %v1096_v45 = vsel %vm391_vm7, %v4072_v38, -inf  ;;  %vm2040_vm6 = vcmp.gt.f32.partialorder %v2036_v15, 0.0 }
 0x279   :  { %v1325_v22 = vsel %vm1317_vm1, %v1313_v25, %v1321_v19  ;;  %v1566_v62 = vsel %vm1558_vm5, %v1554_v44, %v1562_v54  ;;  %v2048_v25 = vsel %vm2040_vm6, %v2036_v15, %v2044_v12  ;;  %v4100_v19 = vld [vmem:[%s4802_s6] ss:$0 sm:$0xff] }
 0x27a   :  { %v4079_v13 = vsel %vm52_vm9, %v1325_v22, -1e+30  ;;  %v4085_v7 = vsel %vm52_vm9, %v1566_v62, -1e+30 }
 0x27b   :  { %615 = vmax.xlane.f32.xlu0 %v614_v57  ;;  %v1337_v5 = vsel %vm391_vm7, %v4079_v13, -inf  ;;  %v1578_v4 = vsel %vm391_vm7, %v4085_v7, -inf  ;;  %v4091_v57 = vsel %vm52_vm9, %v2048_v25, -1e+30 }
 0x27c   :  { %1820 = vmax.xlane.f32.xlu1 %v1819_v2  ;;  %v2060_v2 = vsel %vm391_vm7, %v4091_v57, -inf }
 0x27f   :  { %856 = vmax.xlane.f32.xlu0 %v855_v33 }
 0x283   :  { %1097 = vmax.xlane.f32.xlu0 %v1096_v45 }
 0x287   :  { %1338 = vmax.xlane.f32.xlu0 %v1337_v5 }
 0x28b   :  { %1579 = vmax.xlane.f32.xlu0 %v1578_v4 }
 0x28d   :  { %1849 = vrot.lane.b32.xlu1 %v3692_v17, %s3551_s24 }
 0x28f   :  { %2061 = vmax.xlane.f32.xlu0 %v2060_v2 }
 0x291   :  { %1002 = vrot.lane.b32.xlu1 %v4100_v19, %s3548_s5 }
 0x295   :  { %1243 = vrot.lane.b32.xlu1 %v4100_v19, %s3545_s20  ;;  %s3564_s20 = smov 32  }
 0x299   :  { %1725 = vrot.lane.b32.xlu1 %v4100_v19, %s3547_s0 }
 0x2a5   :  { %2090 = vrot.lane.b32.xlu0 %v3692_v17, %s3549_s22 }
 0x2a7   :  { %v613_v44 = vpop.xlane.xlu1 %612  ;;  %v397_v22 = vpop.xlane.xlu0 %396 }
 0x2a8   :  { %v621_v45 = vsub.f32 %v3835_v39, %v613_v44  ;;  %v405_v39 = vsub.f32 %v3839_v41, %v397_v22 }
 0x2a9   :  { %761 = vrot.lane.b32.xlu0 %v4100_v19, %s3546_s21 }
 0x2aa   :  { %v626_v5 = vmul.f32 1.442695, %v621_v45 }
 0x2ac   :  { %v854_v51 = vpop.xlane.xlu1 %853 }
 0x2ad   :  { %v862_v27 = vsub.f32 %v3855_v3, %v854_v51  ;;  %1484 = vrot.lane.b32.xlu0 %v4100_v19, %s3550_s23 }
 0x2af   :  { %v867_v33 = vmul.f32 1.442695, %v862_v27 }
 0x2b0   :  { %v1095_v54 = vpop.xlane.xlu1 %1094 }
 0x2b1   :  { %3335 = vpow2.f32 %v867_v33  ;;  %v1103_v15 = vsub.f32 %v3867_v9, %v1095_v54 }
 0x2b3   :  { %v1108_v12 = vmul.f32 1.442695, %v1103_v15 }
 0x2b4   :  { %v1336_v17 = vpop.xlane.xlu1 %1335 }
 0x2b5   :  { %3337 = vpow2.f32 %v1108_v12  ;;  %v1344_v25 = vsub.f32 %v3875_v20, %v1336_v17  ;;  %v410_v17 = vmul.f32 1.442695, %v405_v39 }
 0x2b6   :  { %v2059_v62 = vpop.xlane.xlu0 %2058  ;;  %3339 = vpow2.f32 %v626_v5 }
 0x2b7   :  { %v1349_v3 = vmul.f32 1.442695, %v1344_v25  ;;  %v2067_v22 = vsub.f32 %v3888_v49, %v2059_v62 }
 0x2b8   :  { %v1577_v4 = vpop.xlane.xlu1 %1576 }
 0x2b9   :  { %v1585_v51 = vsub.f32 %v3892_v50, %v1577_v4  ;;  %3341 = vpow2.f32 %v1349_v3  ;;  %v2072_v3 = vmul.f32 1.442695, %v2067_v22 }
 0x2bb   :  { %v610_v2 = vpop.xlane.xlu0 %609  ;;  %v1590_v15 = vmul.f32 1.442695, %v1585_v51 }
 0x2bc   :  { %v620_v27 = vsub.f32 %v3906_v18, %v610_v2  ;;  %v1818_v33 = vpop.xlane.xlu1 %1817 }
 0x2bd   :  { %v1826_v20 = vsub.f32 %v3901_v14, %v1818_v33 }
 0x2be   :  { %v4120_v9 = vpop.eup %3335  ;;  %v624_v54 = vmul.f32 1.442695, %v620_v27 }
 0x2bf   :  { %v876_v44 = vsel %vm391_vm7, %v4120_v9, 0.0  ;;  %v1831_v25 = vmul.f32 1.442695, %v1826_v20 }
 0x2c0   :  { %3343 = vpow2.f32 %v624_v54  ;;  %v851_v45 = vpop.xlane.xlu0 %850  ;;  %877 = vadd.xlane.f32.xlu1 %v876_v44  ;;  %v394_v12 = vpop.xlane.xlu1 %393 }
 0x2c1   :  { %v404_v50 = vsub.f32 %v3914_v24, %v394_v12  ;;  %3345 = vpow2.f32 %v1590_v15  ;;  %v861_v24 = vsub.f32 %v3919_v46, %v851_v45 }
 0x2c2   :  { %v4127_v18 = vpop.eup %3337 }
 0x2c3   :  { %v408_v5 = vmul.f32 1.442695, %v404_v50  ;;  %v1117_v41 = vsel %vm391_vm7, %v4127_v18, 0.0  ;;  %v3340_v14 = vpop.eup %3339  ;;  %v865_v49 = vmul.f32 1.442695, %v861_v24 }
 0x2c4   :  { %1118 = vadd.xlane.f32.xlu1 %v1117_v41  ;;  %v635_v27 = vsel %vm391_vm7, %v3340_v14, 0.0 }
 0x2c5   :  { %v1092_v4 = vpop.xlane.xlu0 %1091  ;;  %3347 = vpow2.f32 %v408_v5 }
 0x2c6   :  { %3349 = vpow2.f32 %v410_v17  ;;  %v1102_v51 = vsub.f32 %v3928_v8, %v1092_v4  ;;  %v4135_v33 = vpop.eup %3341 }
 0x2c7   :  { %3351 = vpow2.f32 %v1831_v25  ;;  %v1358_v46 = vsel %vm391_vm7, %v4135_v33, 0.0 }
 0x2c8   :  { %3353 = vpow2.f32 %v2072_v3  ;;  %v1106_v39 = vmul.f32 1.442695, %v1102_v51 }
 0x2c9   :  { %3355 = vpow2.f32 %v865_v49 }
 0x2ca   :  { %v1333_v2 = vpop.xlane.xlu0 %1332  ;;  %3357 = vpow2.f32 %v1106_v39 }
 0x2cb   :  { %v1343_v8 = vsub.f32 %v3935_v21, %v1333_v2 }
 0x2cc   :  { %636 = vadd.xlane.f32.xlu0 %v635_v27 }
 0x2cd   :  { %v3344_v62 = vpop.eup %3343  ;;  %v1347_v21 = vmul.f32 1.442695, %v1343_v8 }
 0x2ce   :  { %3097 = vmatprep.mubr.msk.f32.mxu1 %vm391_vm7, %v3344_v62  ;;  %v632_v54 = vsel %vm391_vm7, %v3344_v62, 0.0  ;;  %v4145_v20 = vpop.eup %3345 }
 0x2cf   :  { %3098 = vmatmul.mubr.msk.f32.vlgmr.msra.gmra.mxu1 %vm391_vm7, %v3340_v14  ;;  %v1574_v44 = vpop.xlane.xlu0 %1573  ;;  %633 = vadd.xlane.f32.xlu1 %v632_v54 }
 0x2d0   :  { %3118 = vmatpush3.msra.mxu1 %v3773_v40  ;;  %v1584_v15 = vsub.f32 %v3942_v48, %v1574_v44  ;;  %1359 = vadd.xlane.f32.xlu0 %v1358_v46  ;;  %v1599_v40 = vsel %vm391_vm7, %v4145_v20, 0.0 }
 0x2d1   :  { %3119 = vmatprep.subr.mxu1 %v3789_v56 }
 0x2d2   :  { %v1588_v45 = vmul.f32 1.442695, %v1584_v15  ;;  %3120 = vmatpush3.msra.mxu1 %v3789_v56  ;;  %v4149_v12 = vpop.eup %3347 }
 0x2d3   :  { %3121 = vmatprep.subr.mxu1 %v3746_v23  ;;  %v4152_v50 = vpop.eup %3349  ;;  %3083 = vmatprep.mubr.msk.f32.mxu0 %vm391_vm7, %v4149_v12 }
 0x2d4   :  { %3359 = vpow2.f32 %v1588_v45  ;;  %3122 = vmatpush3.msra.mxu1 %v3746_v23  ;;  %v1815_v48 = vpop.xlane.xlu1 %1814  ;;  %v4159_v17 = vpop.eup %3351  ;;  %1600 = vadd.xlane.f32.xlu0 %v1599_v40 }
 0x2d5   :  { %3084 = vmatmul.mubr.msk.f32.vlgmr.msra.gmra.mxu0 %vm391_vm7, %v4152_v50  ;;  %v1825_v56 = vsub.f32 %v3951_v16, %v1815_v48  ;;  %3123 = vmatprep.subr.mxu1 %v3758_v31  ;;  %3361 = vpow2.f32 %v1347_v21  ;;  %v1840_v23 = vsel %vm391_vm7, %v4159_v17, 0.0  ;;  %v4172_v41 = vpop.eup %3353 }
 0x2d6   :  { %3104 = vmatpush3.msra.mxu0 %v3766_v36  ;;  %3124 = vmatpush3.msra.mxu1 %v3758_v31  ;;  %v4181_v22 = vpop.eup %3355 }
 0x2d7   :  { %v1829_v5 = vmul.f32 1.442695, %v1825_v56  ;;  %3105 = vmatprep.subr.mxu0 %v3787_v55  ;;  %3145 = vmatprep.subr.mxu1 %v3783_v53  ;;  %v4184_v4 = vpop.eup %3357 }
 0x2d8   :  { %3106 = vmatpush3.msra.mxu0 %v3787_v55  ;;  %1841 = vadd.xlane.f32.xlu0 %v1840_v23  ;;  %v2081_v55 = vsel %vm391_vm7, %v4172_v41, 0.0  ;;  %v1114_v24 = vsel %vm391_vm7, %v4184_v4, 0.0 }
 0x2d9   :  { %3363 = vpow2.f32 %v1829_v5  ;;  %3107 = vmatprep.subr.mxu0 %v3750_v26  ;;  %v2056_v36 = vpop.xlane.xlu1 %2055 }
 0x2da   :  { %3108 = vmatpush3.msra.mxu0 %v3750_v26  ;;  %v2066_v16 = vsub.f32 %v3963_v52, %v2056_v36  ;;  %v873_v26 = vsel %vm391_vm7, %v4181_v22, 0.0 }
 0x2db   :  { %3109 = vmatprep.subr.mxu0 %v3760_v32 }
 0x2dc   :  { %v2070_v31 = vmul.f32 1.442695, %v2066_v16  ;;  %3110 = vmatpush3.msra.mxu0 %v3760_v32  ;;  %2082 = vadd.xlane.f32.xlu0 %v2081_v55 }
 0x2dd   :  { %3131 = vmatprep.subr.mxu0 %v3769_v37 }
 0x2de   :  { %3365 = vpow2.f32 %v2070_v31  ;;  %v403_v25 = vpop.xlane.xlu1 %402 }
 0x2df   :  { %v407_v31 = vsub.f32 %v3971_v35, %v403_v25 }
 0x2e0   :  { %874 = vadd.xlane.f32.xlu0 %v873_v26 }
 0x2e1   :  { %v4188_v52 = vpop.eup %3359 }
 0x2e2   :  { %v1596_v32 = vsel %vm391_vm7, %v4188_v52, 0.0  ;;  %v4195_v2 = vpop.eup %3361 }
 0x2e3   :  { %1597 = vadd.xlane.f32.xlu1 %v1596_v32  ;;  %v619_v14 = vpop.xlane.xlu1 %618  ;;  %v1355_v62 = vsel %vm391_vm7, %v4195_v2, 0.0 }
 0x2e4   :  { %v623_v3 = vsub.f32 %v3980_v47, %v619_v14  ;;  %1115 = vadd.xlane.f32.xlu0 %v1114_v24  ;;  %v414_v14 = vmul.f32 1.442695, %v407_v31 }
 0x2e6   :  { %v4197_v51 = vpop.eup %3363  ;;  %v630_v27 = vmul.f32 1.442695, %v623_v3 }
 0x2e7   :  { %v1837_v49 = vsel %vm391_vm7, %v4197_v51, 0.0 }
 0x2e8   :  { %3367 = vpow2.f32 %v630_v27  ;;  %1838 = vadd.xlane.f32.xlu1 %v1837_v49  ;;  %v860_v54 = vpop.xlane.xlu1 %859  ;;  %1356 = vadd.xlane.f32.xlu0 %v1355_v62 }
 0x2e9   :  { %v864_v47 = vsub.f32 %v3987_v61, %v860_v54 }
 0x2eb   :  { %v4204_v39 = vpop.eup %3365  ;;  %v871_v44 = vmul.f32 1.442695, %v864_v47 }
 0x2ec   :  { %v2078_v46 = vsel %vm391_vm7, %v4204_v39, 0.0 }
 0x2ed   :  { %3369 = vpow2.f32 %v871_v44  ;;  %2079 = vadd.xlane.f32.xlu1 %v2078_v46  ;;  %v1101_v8 = vpop.xlane.xlu1 %1100 }
 0x2ee   :  { %v1105_v15 = vsub.f32 %v3996_v29, %v1101_v8 }
 0x2f0   :  { %v1112_v45 = vmul.f32 1.442695, %v1105_v15 }
 0x2f2   :  { %3371 = vpow2.f32 %v1112_v45  ;;  %v1342_v21 = vpop.xlane.xlu1 %1341 }
 0x2f3   :  { %v1346_v40 = vsub.f32 %v4005_v42, %v1342_v21 }
 0x2f5   :  { %v4210_v48 = vpop.eup %3367  ;;  %v1353_v56 = vmul.f32 1.442695, %v1346_v40 }
 0x2f6   :  { %v641_v61 = vsel %vm391_vm7, %v4210_v48, 0.0 }
 0x2f7   :  { %3373 = vpow2.f32 %v1353_v56  ;;  %642 = vadd.xlane.f32.xlu0 %v641_v61  ;;  %v1583_v5 = vpop.xlane.xlu1 %1582 }
 0x2f8   :  { %v1587_v23 = vsub.f32 %v4015_v30, %v1583_v5 }
 0x2fa   :  { %v4215_v36 = vpop.eup %3369  ;;  %v1594_v16 = vmul.f32 1.442695, %v1587_v23 }
 0x2fb   :  { %v882_v29 = vsel %vm391_vm7, %v4215_v36, 0.0 }
 0x2fc   :  { %3375 = vpow2.f32 %v1594_v16  ;;  %v1824_v42 = vpop.xlane.xlu0 %1823  ;;  %883 = vadd.xlane.f32.xlu0 %v882_v29 }
 0x2fd   :  { %v1828_v55 = vsub.f32 %v4030_v0, %v1824_v42 }
 0x2ff   :  { %v4221_v26 = vpop.eup %3371  ;;  %v1835_v32 = vmul.f32 1.442695, %v1828_v55 }
 0x300   :  { %v400_v3 = vpop.xlane.xlu0 %399  ;;  %v1123_v30 = vsel %vm391_vm7, %v4221_v26, 0.0 }
 0x301   :  { %3377 = vpow2.f32 %v1835_v32  ;;  %v406_v24 = vsub.f32 %v4036_v10, %v400_v3  ;;  %1124 = vadd.xlane.f32.xlu0 %v1123_v30  ;;  %v2065_v27 = vpop.xlane.xlu1 %2064 }
 0x302   :  { %v2069_v35 = vsub.f32 %v4044_v63, %v2065_v27  ;;  %3379 = vpow2.f32 %v414_v14 }
 0x303   :  { %v412_v25 = vmul.f32 1.442695, %v406_v24  ;;  %v4843_v24 = vld [vmem:[#allocation5_spill] sm:$0xff] }
 0x304   :  { %v4227_v49 = vpop.eup %3373  ;;  %v2076_v0 = vmul.f32 1.442695, %v2069_v35  ;;  %v616_v62 = vpop.xlane.xlu0 %615 }
 0x305   :  { %3381 = vpow2.f32 %v412_v25  ;;  %v622_v54 = vsub.f32 %v4050_v6, %v616_v62  ;;  %v1364_v47 = vsel %vm391_vm7, %v4227_v49, 0.0  ;;  %v1821_v55 = vpop.xlane.xlu1 %1820 }
 0x306   :  { %3383 = vpow2.f32 %v2076_v0  ;;  %1365 = vadd.xlane.f32.xlu1 %v1364_v47 }
 0x307   :  { %v628_v44 = vmul.f32 1.442695, %v622_v54 }
 0x308   :  { %v857_v10 = vpop.xlane.xlu0 %856 }
 0x309   :  { %v4232_v46 = vpop.eup %3375  ;;  %3385 = vpow2.f32 %v628_v44  ;;  %v863_v63 = vsub.f32 %v4064_v58, %v857_v10 }
 0x30a   :  { %v1605_v8 = vsel %vm391_vm7, %v4232_v46, 0.0 }
 0x30b   :  { %v869_v15 = vmul.f32 1.442695, %v863_v63  ;;  %1606 = vadd.xlane.f32.xlu1 %v1605_v8 }
 0x30c   :  { %v1098_v45 = vpop.xlane.xlu0 %1097 }
 0x30d   :  { %3387 = vpow2.f32 %v869_v15  ;;  %v1104_v6 = vsub.f32 %v4072_v38, %v1098_v45 }
 0x30e   :  { %v4238_v21 = vpop.eup %3377 }
 0x30f   :  { %v1110_v40 = vmul.f32 1.442695, %v1104_v6  ;;  %v1846_v56 = vsel %vm391_vm7, %v4238_v21, 0.0  ;;  %v4242_v5 = vpop.eup %3379 }
 0x310   :  { %v1339_v61 = vpop.xlane.xlu0 %1338  ;;  %1847 = vadd.xlane.f32.xlu1 %v1846_v56  ;;  %v425_v0 = vsel %vm391_vm7, %v4242_v5, 0.0 }
 0x311   :  { %3389 = vpow2.f32 %v1110_v40  ;;  %v1345_v58 = vsub.f32 %v4079_v13, %v1339_v61 }
 0x312   :  { %v4245_v23 = vpop.eup %3381 }
 0x313   :  { %v4247_v16 = vpop.eup %3383  ;;  %3086 = vmatprep.mubr.msk.f32.mxu0 %vm391_vm7, %v4245_v23  ;;  %v1351_v38 = vmul.f32 1.442695, %v1345_v58 }
 0x314   :  { %v1580_v29 = vpop.xlane.xlu0 %1579  ;;  %3087 = vmatmul.mubr.msk.f32.gmra.mxu0 %vm391_vm7, %v4242_v5  ;;  %v2087_v31 = vsel %vm391_vm7, %v4247_v16, 0.0 }
 0x315   :  { %v1586_v42 = vsub.f32 %v4085_v7, %v1580_v29  ;;  %3111 = vmatprep.mubr.msk.f32.mxu0 %vm391_vm7, %v4181_v22  ;;  %2088 = vadd.xlane.f32.xlu1 %v2087_v31  ;;  %3391 = vpow2.f32 %v1351_v38  ;;  %v1827_v22 = vsub.f32 %v4056_v11, %v1821_v55 }
 0x316   :  { %v3386_v13 = vpop.eup %3385 }
 0x317   :  { %3100 = vmatprep.mubr.msk.f32.mxu1 %vm391_vm7, %v3386_v13  ;;  %v638_v32 = vsel %vm391_vm7, %v3386_v13, 0.0  ;;  %v1592_v14 = vmul.f32 1.442695, %v1586_v42 }
 0x318   :  { %3101 = vmatmul.mubr.msk.f32.gmra.mxu1 %vm391_vm7, %v4210_v48  ;;  %3112 = vmatmul.mubr.msk.f32.vlgmr.msra.gmra.mxu0 %vm391_vm7, %v4120_v9  ;;  %v2062_v3 = vpop.xlane.xlu0 %2061  ;;  %v1833_v9 = vmul.f32 1.442695, %v1827_v22  ;;  %v4841_v48 = vld [vmem:[#allocation9_spill] sm:$0xff] }
 0x319   :  { %3132 = vmatpush3.msra.mxu0 %v3769_v37  ;;  %3125 = vmatprep.mubr.msk.f32.mxu1 %vm391_vm7, %v4184_v4  ;;  %3393 = vpow2.f32 %v1592_v14  ;;  %v2068_v4 = vsub.f32 %v4091_v57, %v2062_v3  ;;  %v4837_v57 = vld [vmem:[#allocation8_spill] sm:$0xff] }
 0x31a   :  { %v3388_v7 = vpop.eup %3387  ;;  %3133 = vmatprep.subr.mxu0 %v3795_v60  ;;  %639 = vadd.xlane.f32.xlu1 %v638_v32  ;;  %3395 = vpow2.f32 %v1833_v9 }
 0x31b   :  { %3134 = vmatpush3.msra.mxu0 %v3795_v60  ;;  %3114 = vmatprep.mubr.msk.f32.mxu0 %vm391_vm7, %v3388_v7  ;;  %v879_v37 = vsel %vm391_vm7, %v3388_v7, 0.0  ;;  %v4836_v60 = vld [vmem:[#allocation4_spill] sm:$0xff] }
 0x31c   :  { %3135 = vmatprep.subr.mxu0 %v3754_v28  ;;  %3115 = vmatmul.mubr.msk.f32.gmra.mxu0 %vm391_vm7, %v4215_v36  ;;  %v1850_v36 = vpop.permute.xlu1 %1849 }
 0x31d   :  { %3126 = vmatmul.mubr.msk.f32.vlgmr.msra.gmra.mxu1 %vm391_vm7, %v4127_v18  ;;  %3136 = vmatpush3.msra.mxu0 %v3754_v28  ;;  %v2074_v28 = vmul.f32 1.442695, %v2068_v4  ;;  %v4839_v18 = vld [vmem:[#allocation12_spill] sm:$0xff] }
 0x31e   :  { %v3390_v11 = vpop.eup %3389  ;;  %3146 = vmatpush3.msra.mxu1 %v3783_v53  ;;  %3137 = vmatprep.subr.mxu0 %v3764_v34 }
 0x31f   :  { %3139 = vmatprep.mubr.msk.f32.mxu0 %vm391_vm7, %v4195_v2  ;;  %3147 = vmatprep.subr.mxu1 %v3793_v59  ;;  %v1120_v53 = vsel %vm391_vm7, %v3390_v11, 0.0  ;;  %3397 = vpow2.f32 %v2074_v28 }
 0x320   :  { %880 = vadd.xlane.f32.xlu1 %v879_v37  ;;  %3138 = vmatpush3.msra.mxu0 %v3764_v34  ;;  %v4342_v25 = vpop.permute.xlu1 %1002 }
 0x321   :  { %3148 = vmatpush3.msra.mxu1 %v3793_v59  ;;  %3128 = vmatprep.mubr.msk.f32.mxu1 %vm391_vm7, %v3390_v11  ;;  %v4838_v59 = vld [vmem:[#allocation7_spill] sm:$0xff] }
 0x322   :  { %3149 = vmatprep.subr.mxu1 %v4836_v60  ;;  %3159 = vmatprep.subr.mxu0 %v4837_v57  ;;  %v3392_v34 = vpop.eup %3391 }
 0x323   :  { %3129 = vmatmul.mubr.msk.f32.gmra.mxu1 %vm391_vm7, %v4221_v26  ;;  %3140 = vmatmul.mubr.msk.f32.vlgmr.msra.gmra.mxu0 %vm391_vm7, %v4135_v33  ;;  %v4840_v33 = vld [vmem:[#allocation6_spill] sm:$0xff]  ;;  %v4842_v26 = vld [vmem:[#allocation11_spill] sm:$0xff] }
 0x324   :  { %3150 = vmatpush3.msra.mxu1 %v4836_v60  ;;  %3160 = vmatpush3.msra.mxu0 %v4837_v57 }
 0x325   :  { %3151 = vmatprep.subr.mxu1 %v4838_v59  ;;  %3153 = vmatprep.mubr.msk.f32.mxu1 %vm391_vm7, %v4188_v52  ;;  %v1361_v52 = vsel %vm391_vm7, %v3392_v34, 0.0 }
 0x326   :  { %3161 = vmatprep.subr.mxu0 %v4839_v18  ;;  %1121 = vadd.xlane.f32.xlu1 %v1120_v53  ;;  %v3394_v2 = vpop.eup %3393 }
 0x327   :  { %3152 = vmatpush3.msra.mxu1 %v4838_v59  ;;  %3162 = vmatpush3.msra.mxu0 %v4839_v18  ;;  %v1602_v30 = vsel %vm391_vm7, %v3394_v2, 0.0 }
 0x328   :  { %3142 = vmatprep.mubr.msk.f32.mxu0 %vm391_vm7, %v3392_v34  ;;  %3163 = vmatprep.subr.mxu0 %v4840_v33 }
 0x329   :  { %3173 = vmatprep.subr.mxu1 %v4841_v48  ;;  %3143 = vmatmul.mubr.msk.f32.gmra.mxu0 %vm391_vm7, %v4227_v49  ;;  %v416_v49 = vsel %vm391_vm7, %v4149_v12, 0.0 }
 0x32a   :  { %3154 = vmatmul.mubr.msk.f32.vlgmr.msra.gmra.mxu1 %vm391_vm7, %v4145_v20  ;;  %3164 = vmatpush3.msra.mxu0 %v4840_v33  ;;  %v3396_v20 = vpop.eup %3395 }
 0x32b   :  { %3174 = vmatpush3.msra.mxu1 %v4841_v48  ;;  %3167 = vmatprep.mubr.msk.f32.mxu0 %vm391_vm7, %v4197_v51  ;;  %v2091_v51 = vpop.permute.xlu0 %2090  ;;  %v1843_v27 = vsel %vm391_vm7, %v3396_v20, 0.0 }
 0x32c   :  { %3175 = vmatprep.subr.mxu1 %v4842_v26  ;;  %1362 = vadd.xlane.f32.xlu1 %v1361_v52  ;;  %v3398_v35 = vpop.eup %3397 }
 0x32d   :  { %3165 = vmatprep.subr.mxu0 %v1850_v36  ;;  %3176 = vmatpush3.msra.mxu1 %v4842_v26 }
 0x32e   :  { %3166 = vmatpush3.msra.mxu0 %v1850_v36  ;;  %3156 = vmatprep.mubr.msk.f32.mxu1 %vm391_vm7, %v3394_v2 }
 0x32f   :  { %3177 = vmatprep.subr.mxu1 %v4843_v24  ;;  %1603 = vadd.xlane.f32.xlu0 %v1602_v30  ;;  %v4352_v54 = vpop.permute.xlu0 %761 }
 0x330   :  { %3178 = vmatpush3.msra.mxu1 %v4843_v24  ;;  %3168 = vmatmul.mubr.msk.f32.vlgmr.msra.gmra.mxu0 %vm391_vm7, %v4159_v17  ;;  %v2084_v17 = vsel %vm391_vm7, %v3398_v35, 0.0 }
 0x331   :  { %3157 = vmatmul.mubr.msk.f32.gmra.mxu1 %vm391_vm7, %v4232_v46  ;;  %3170 = vmatprep.mubr.msk.f32.mxu0 %vm391_vm7, %v3396_v20 }
 0x332   :  { %3179 = vmatprep.subr.mxu1 %v2091_v51  ;;  %3181 = vmatprep.mubr.msk.f32.mxu1 %vm391_vm7, %v4204_v39  ;;  %v419_v39 = vsel %vm391_vm7, %v4152_v50, 0.0 }
 0x333   :  { %3180 = vmatpush3.msra.mxu1 %v2091_v51  ;;  %1844 = vadd.xlane.f32.xlu0 %v1843_v27  ;;  %v4356_v47 = vpop.permute.xlu0 %1484 }
 0x334   :  { %3171 = vmatmul.mubr.msk.f32.gmra.mxu0 %vm391_vm7, %v4238_v21 }
 0x335   :  { %3182 = vmatmul.mubr.msk.f32.vlgmr.msra.gmra.mxu1 %vm391_vm7, %v4172_v41  ;;  %v4344_v41 = vpop.permute.xlu1 %1243 }
 0x336   :  { %3184 = vmatprep.mubr.msk.f32.mxu1 %vm391_vm7, %v3398_v35 }
 0x337   :  { %2085 = vadd.xlane.f32.xlu0 %v2084_v17 }
 0x339   :  { %3185 = vmatmul.mubr.msk.f32.gmra.mxu1 %vm391_vm7, %v4247_v16  ;;  %v4350_v62 = vpop.permute.xlu1 %1725 }
 0x33d   :  { %2207 = vrot.lane.b32.xlu1 %v4100_v19, %s3549_s22 }
 0x349   :  { %v878_v50 = vpop.xlane.xlu1 %877 }
 0x34d   :  { %1966 = vrot.lane.b32.xlu0 %v4100_v19, %s3551_s24  ;;  %v422_v19 = vsel %vm391_vm7, %v4245_v23, 0.0  ;;  %v1119_v44 = vpop.xlane.xlu1 %1118 }
 0x355   :  { %v637_v10 = vpop.xlane.xlu0 %636 }
 0x356   :  { %3399 = vrcp.f32 %v637_v10 }
 0x358   :  { %v634_v46 = vpop.xlane.xlu1 %633 }
 0x359   :  { %3401 = vrcp.f32 %v634_v46  ;;  %v1360_v5 = vpop.xlane.xlu0 %1359 }
 0x35d   :  { %v1601_v29 = vpop.xlane.xlu0 %1600 }
 0x361   :  { %420 = vadd.xlane.f32.xlu1 %v419_v39  ;;  %v1842_v32 = vpop.xlane.xlu0 %1841 }
 0x363   :  { %v3400_v12 = vpop.eup %3399 }
 0x365   :  { %v2083_v7 = vpop.xlane.xlu0 %2082 }
 0x366   :  { %v3402_v15 = vpop.eup %3401 }
 0x369   :  { %v875_v3 = vpop.xlane.xlu0 %874 }
 0x36c   :  { %417 = vadd.xlane.f32.xlu0 %v416_v49  ;;  %v1598_v58 = vpop.xlane.xlu1 %1597 }
 0x36d   :  { %v1116_v11 = vpop.xlane.xlu0 %1115 }
 0x370   :  { %426 = vadd.xlane.f32.xlu0 %v425_v0 }
 0x371   :  { %v4360_v13 = vpop.xlane.xlu1 %1838  ;;  %v1357_v4 = vpop.xlane.xlu0 %1356 }
 0x374   :  { %423 = vadd.xlane.f32.xlu0 %v422_v19 }
 0x376   :  { %v4364_v14 = vpop.xlane.xlu1 %2079 }
 0x380   :  { %v643_v60 = vpop.xlane.xlu0 %642 }
 0x385   :  { %v884_v53 = vpop.xlane.xlu0 %883 }
 0x38a   :  { %v1125_v33 = vpop.xlane.xlu0 %1124 }
 0x38f   :  { %v3099_v63 = vpop.f32.mrf.mxu1  ;;  %v1366_v22 = vpop.xlane.xlu1 %1365 }
 0x390   :  { %v758_v8 = vmul.f32 %v3400_v12, %v3099_v63 }
 0x391   :  { %v734_v45 = vpop.f32.mrf.mxu1 }
 0x392   :  { %v765_v6 = vadd.f32 %v4352_v54, %v758_v8  ;;  %v757_v21 = vmul.f32 %v3402_v15, %v734_v45 }
 0x394   :  { %v774_v40 = vmul.f32 1.442695, %v765_v6  ;;  %v764_v56 = vadd.f32 %v4352_v54, %v757_v21  ;;  %vm769_vm8 = vcmp.gt.f32.partialorder %v765_v6, 0.0  ;;  %v4366_v37 = vpop.xlane.xlu1 %1606 }
 0x395   :  { %v4372_v34 = vpop.f32.mrf.mxu0 }
 0x396   :  { %3403 = vpow2.f32 %v774_v40  ;;  %v772_v61 = vmul.f32 1.442695, %v764_v56  ;;  %vm768_vm10 = vcmp.gt.f32.partialorder %v764_v56, 0.0 }
 0x397   :  { %v4374_v18 = vpop.f32.mrf.mxu0 }
 0x398   :  { %3405 = vpow2.f32 %v772_v61 }
 0x399   :  { %v4368_v9 = vpop.xlane.xlu1 %1847  ;;  %3407 = vrcp.f32 %v878_v50 }
 0x39a   :  { %3409 = vrcp.f32 %v643_v60 }
 0x39e   :  { %v4370_v28 = vpop.xlane.xlu1 %2088 }
 0x3a3   :  { %v3404_v23 = vpop.eup %3403  ;;  %v640_v57 = vpop.xlane.xlu1 %639 }
 0x3a4   :  { %v2832_v16 = vadd.f32 -1.0, %v3404_v23  ;;  %3411 = vrcp.f32 %v640_v57 }
 0x3a5   :  { %v3406_v38 = vpop.eup %3405  ;;  %3413 = vrcp.f32 %v1119_v44 }
 0x3a6   :  { %v785_v31 = vsel %vm769_vm8, %v765_v6, %v2832_v16  ;;  %v2831_v42 = vadd.f32 -1.0, %v3406_v38  ;;  %3415 = vrcp.f32 %v875_v3  ;;  %v3408_v36 = vpop.eup %3407 }
 0x3a7   :  { %794 = vrot.lane.b32.xlu0 %v785_v31, %s3561_s18  ;;  %3417 = vrcp.f32 %v884_v53  ;;  %v3410_v26 = vpop.eup %3409 }
 0x3a8   :  { %v784_v55 = vsel %vm768_vm10, %v764_v56, %v2831_v42  ;;  %3419 = vrcp.f32 %v1116_v11 }
 0x3a9   :  { %792 = vrot.lane.b32.xlu1 %v784_v55, %s3561_s18  ;;  %v881_v59 = vpop.xlane.xlu1 %880 }
 0x3aa   :  { %3421 = vrcp.f32 %v881_v59 }
 0x3ab   :  { %3423 = vrcp.f32 %v1360_v5 }
 0x3ac   :  { %3425 = vrcp.f32 %v1125_v33 }
 0x3ad   :  { %3427 = vrcp.f32 %v1601_v29 }
 0x3af   :  { %v1122_v48 = vpop.xlane.xlu1 %1121 }
 0x3b0   :  { %3429 = vrcp.f32 %v1122_v48 }
 0x3b1   :  { %3431 = vrcp.f32 %v1842_v32  ;;  %v3412_v27 = vpop.eup %3411 }
 0x3b2   :  { %3433 = vrcp.f32 %v2083_v7  ;;  %v3414_v39 = vpop.eup %3413 }
 0x3b3   :  { %3435 = vrcp.f32 %v1598_v58  ;;  %v3416_v50 = vpop.eup %3415 }
 0x3b4   :  { %3437 = vrcp.f32 %v1357_v4  ;;  %v3418_v10 = vpop.eup %3417 }
 0x3b5   :  { %3439 = vrcp.f32 %v1366_v22  ;;  %v3420_v40 = vpop.eup %3419  ;;  %v1363_v11 = vpop.xlane.xlu1 %1362 }
 0x3b7   :  { %v3422_v16 = vpop.eup %3421 }
 0x3b8   :  { %v1604_v45 = vpop.xlane.xlu0 %1603  ;;  %v3424_v29 = vpop.eup %3423 }
 0x3b9   :  { %v3426_v32 = vpop.eup %3425 }
 0x3ba   :  { %v3428_v3 = vpop.eup %3427 }
 0x3bc   :  { %v1845_v4 = vpop.xlane.xlu0 %1844 }
 0x3bd   :  { %v3430_v53 = vpop.eup %3429 }
 0x3d4   :  { %v4376_v2 = vpop.f32.mrf.mxu0 }
 0x3d6   :  { %v4378_v52 = vpop.f32.mrf.mxu0 }
 0x3d8   :  { %v3102_v30 = vpop.f32.mrf.mxu1  ;;  %v3113_v20 = vpop.f32.mrf.mxu0 }
 0x3d9   :  { %v760_v24 = vmul.f32 %v3410_v26, %v3102_v30  ;;  %v999_v51 = vmul.f32 %v3408_v36, %v3113_v20 }
 0x3da   :  { %v744_v35 = vpop.f32.mrf.mxu1  ;;  %v975_v17 = vpop.f32.mrf.mxu0 }
 0x3db   :  { %v4381_v49 = vadd.f32 %v4352_v54, %v760_v24  ;;  %v4384_v0 = vadd.f32 %v4342_v25, %v999_v51  ;;  %v759_v19 = vmul.f32 %v3412_v27, %v744_v35  ;;  %v998_v8 = vmul.f32 %v3416_v50, %v975_v17 }
 0x3dc   :  { %v3116_v44 = vpop.f32.mrf.mxu0 }
 0x3dd   :  { %v778_v46 = vmul.f32 1.442695, %v4381_v49  ;;  %v1015_v12 = vmul.f32 1.442695, %v4384_v0  ;;  %v4389_v63 = vadd.f32 %v4352_v54, %v759_v19  ;;  %v3127_v15 = vpop.f32.mrf.mxu1  ;;  %v1001_v6 = vmul.f32 %v3418_v10, %v3116_v44  ;;  %v2086_v44 = vpop.xlane.xlu0 %2085 }
 0x3de   :  { %v1240_v21 = vmul.f32 %v3414_v39, %v3127_v15  ;;  %v985_v61 = vpop.f32.mrf.mxu0  ;;  %v4396_v54 = vadd.f32 %v4342_v25, %v998_v8  ;;  %v4430_v10 = vpop.permute.xlu1 %2207  ;;  %vm771_vm12 = vcmp.gt.f32.partialorder %v4381_v49, 0.0  ;;  %vm1010_vm15 = vcmp.gt.f32.partialorder %v4384_v0, 0.0 }
 0x3df   :  { %3441 = vpow2.f32 %v778_v46  ;;  %v776_v56 = vmul.f32 1.442695, %v4389_v63  ;;  %v1216_v5 = vpop.f32.mrf.mxu1  ;;  %v4399_v38 = vadd.f32 %v4342_v25, %v1001_v6  ;;  %v1000_v42 = vmul.f32 %v3422_v16, %v985_v61 }
 0x3e0   :  { %3443 = vpow2.f32 %v1015_v12  ;;  %v4393_v58 = vadd.f32 %v4344_v41, %v1240_v21  ;;  %v1239_v23 = vmul.f32 %v3420_v40, %v1216_v5  ;;  %v1013_v59 = vmul.f32 1.442695, %v4396_v54 }
 0x3e1   :  { %3445 = vpow2.f32 %v776_v56  ;;  %v1019_v33 = vmul.f32 1.442695, %v4399_v38  ;;  %v4414_v26 = vadd.f32 %v4342_v25, %v1000_v42  ;;  %vm770_vm13 = vcmp.gt.f32.partialorder %v4389_v63, 0.0 }
 0x3e2   :  { %3447 = vrcp.f32 %v4360_v13  ;;  %v1256_v31 = vmul.f32 1.442695, %v4393_v58  ;;  %v4404_v55 = vadd.f32 %v4344_v41, %v1239_v23  ;;  %vm1251_vm1 = vcmp.gt.f32.partialorder %v4393_v58, 0.0 }
 0x3e3   :  { %3449 = vrcp.f32 %v4364_v14  ;;  %v3130_v7 = vpop.f32.mrf.mxu1  ;;  %v3141_v22 = vpop.f32.mrf.mxu0  ;;  %v1017_v25 = vmul.f32 1.442695, %v4414_v26  ;;  %vm1012_vm5 = vcmp.gt.f32.partialorder %v4399_v38, 0.0  ;;  %vm1009_vm6 = vcmp.gt.f32.partialorder %v4396_v54, 0.0 }
 0x3e4   :  { %3451 = vrcp.f32 %v4366_v37  ;;  %v1254_v60 = vmul.f32 1.442695, %v4404_v55  ;;  %v1242_v57 = vmul.f32 %v3426_v32, %v3130_v7  ;;  %v1481_v13 = vmul.f32 %v3424_v29, %v3141_v22  ;;  %v4411_v14 = vpop.eup %3431  ;;  %v4443_v29 = vpop.permute.xlu0 %1966 }
 0x3e5   :  { %3453 = vrcp.f32 %v1604_v45  ;;  %v1226_v48 = vpop.f32.mrf.mxu1  ;;  %v1457_v36 = vpop.f32.mrf.mxu0  ;;  %vm1250_vm0 = vcmp.gt.f32.partialorder %v4404_v55, 0.0  ;;  %vm1011_vm10 = vcmp.gt.f32.partialorder %v4414_v26, 0.0 }
 0x3e6   :  { %3455 = vpow2.f32 %v1256_v31  ;;  %v4417_v37 = vadd.f32 %v4344_v41, %v1242_v57  ;;  %v1241_v30 = vmul.f32 %v3430_v53, %v1226_v48  ;;  %v4419_v20 = vpop.eup %3433  ;;  %v4422_v51 = vadd.f32 %v4356_v47, %v1481_v13 }
 0x3e7   :  { %3457 = vpow2.f32 %v1254_v60  ;;  %v3436_v24 = vpop.eup %3435 }
 0x3e8   :  { %3459 = vrcp.f32 %v1363_v11  ;;  %v3438_v27 = vpop.eup %3437  ;;  %v1260_v35 = vmul.f32 1.442695, %v4417_v37  ;;  %v4427_v39 = vadd.f32 %v4344_v41, %v1241_v30  ;;  %v1497_v8 = vmul.f32 1.442695, %v4422_v51 }
 0x3e9   :  { %3461 = vpow2.f32 %v1019_v33  ;;  %v3144_v17 = vpop.f32.mrf.mxu0  ;;  %v3440_v50 = vpop.eup %3439  ;;  %v1480_v15 = vmul.f32 %v3438_v27, %v1457_v36  ;;  %vm1253_vm8 = vcmp.gt.f32.partialorder %v4417_v37, 0.0 }
 0x3ea   :  { %3463 = vpow2.f32 %v1013_v59  ;;  %v3155_v19 = vpop.f32.mrf.mxu1  ;;  %v1483_v23 = vmul.f32 %v3440_v50, %v3144_v17  ;;  %v421_v11 = vpop.xlane.xlu1 %420 }
 0x3eb   :  { %3465 = vrcp.f32 %v4368_v9  ;;  %v1722_v46 = vmul.f32 %v3428_v3, %v3155_v19  ;;  %v1467_v45 = vpop.f32.mrf.mxu0  ;;  %v1258_v9 = vmul.f32 1.442695, %v4427_v39  ;;  %v4450_v7 = vadd.f32 %v4356_v47, %v1480_v15 }
 0x3ec   :  { %v3442_v12 = vpop.eup %3441  ;;  %3467 = vrcp.f32 %v1845_v4  ;;  %v1698_v6 = vpop.f32.mrf.mxu1  ;;  %v4458_v33 = vadd.f32 %v4356_v47, %v1483_v23 }
 0x3ed   :  { %v3444_v21 = vpop.eup %3443  ;;  %3469 = vpow2.f32 %v1260_v35  ;;  %v4434_v41 = vadd.f32 %v4350_v62, %v1722_v46  ;;  %v1721_v40 = vmul.f32 %v3436_v24, %v1698_v6  ;;  %v2834_v56 = vadd.f32 -1.0, %v3442_v12 }
 0x3ee   :  { %v3446_v61 = vpop.eup %3445  ;;  %3471 = vpow2.f32 %v1017_v25  ;;  %v2840_v57 = vadd.f32 -1.0, %v3444_v21  ;;  %v1501_v6 = vmul.f32 1.442695, %v4458_v33 }
 0x3ef   :  { %v4438_v5 = vpop.eup %3447  ;;  %v4441_v16 = vadd.f32 %v4350_v62, %v1721_v40  ;;  %v787_v31 = vsel %vm771_vm12, %v4381_v49, %v2834_v56  ;;  %v2833_v42 = vadd.f32 -1.0, %v3446_v61  ;;  %3473 = vrcp.f32 %v4370_v28 }
 0x3f0   :  { %v4446_v32 = vpop.eup %3449  ;;  %v3169_v22 = vpop.f32.mrf.mxu0  ;;  %798 = vrot.lane.b32.xlu0 %v787_v31, %s3561_s18  ;;  %3475 = vpow2.f32 %v1497_v8  ;;  %v1738_v4 = vmul.f32 1.442695, %v4434_v41  ;;  %vm1492_vm12 = vcmp.gt.f32.partialorder %v4422_v51, 0.0 }
 0x3f1   :  { %v3452_v3 = vpop.eup %3451  ;;  %v3158_v60 = vpop.f32.mrf.mxu1  ;;  %v786_v49 = vsel %vm770_vm13, %v4389_v63, %v2833_v42  ;;  %3477 = vrcp.f32 %v2086_v44  ;;  %v1736_v48 = vmul.f32 1.442695, %v4441_v16  ;;  %v1495_v63 = vmul.f32 1.442695, %v4450_v7 }
 0x3f2   :  { %v3454_v13 = vpop.eup %3453  ;;  %v1724_v28 = vmul.f32 %v3452_v3, %v3158_v60  ;;  %v1939_v53 = vpop.f32.mrf.mxu0  ;;  %796 = vrot.lane.b32.xlu1 %v786_v49, %s3561_s18  ;;  %3479 = vpow2.f32 %v1258_v9  ;;  %v1963_v24 = vmul.f32 %v4411_v14, %v3169_v22  ;;  %v1026_v44 = vsel %vm1010_vm15, %v4384_v0, %v2840_v57 }
 0x3f3   :  { %v3456_v59 = vpop.eup %3455  ;;  %v1708_v36 = vpop.f32.mrf.mxu1  ;;  %3481 = vrcp.f32 %v421_v11  ;;  %vm1252_vm13 = vcmp.gt.f32.partialorder %v4427_v39, 0.0  ;;  %vm1733_vm15 = vcmp.gt.f32.partialorder %v4434_v41, 0.0 }
 0x3f4   :  { %v3458_v30 = vpop.eup %3457  ;;  %v1723_v27 = vmul.f32 %v3454_v13, %v1708_v36  ;;  %v4464_v35 = vpop.f32.mrf.mxu0  ;;  %3483 = vpow2.f32 %v1738_v4  ;;  %v4468_v8 = vadd.f32 %v4350_v62, %v1724_v28  ;;  %v2848_v40 = vadd.f32 -1.0, %v3456_v59 }
 0x3f5   :  { %v3460_v17 = vpop.eup %3459  ;;  %v3183_v25 = vpop.f32.mrf.mxu1  ;;  %v2847_v50 = vadd.f32 -1.0, %v3458_v30  ;;  %v4476_v0 = vadd.f32 %v4443_v29, %v1963_v24 }
 0x3f6   :  { %v418_v19 = vpop.xlane.xlu0 %417  ;;  %v3462_v46 = vpop.eup %3461  ;;  %v1482_v12 = vmul.f32 %v3460_v17, %v1467_v45  ;;  %v4471_v15 = vadd.f32 %v4350_v62, %v1723_v27  ;;  %1035 = vrot.lane.b32.xlu1 %v1026_v44, %s3562_s3  ;;  %v2204_v9 = vmul.f32 %v4419_v20, %v3183_v25  ;;  %v1742_v4 = vmul.f32 1.442695, %v4468_v8 }
 0x3f7   :  { %3485 = vrcp.f32 %v418_v19  ;;  %v3464_v14 = vpop.eup %3463  ;;  %v2180_v21 = vpop.f32.mrf.mxu1  ;;  %v1266_v42 = vsel %vm1250_vm0, %v4404_v55, %v2847_v50  ;;  %v2842_v22 = vadd.f32 -1.0, %v3462_v46  ;;  %v1962_v20 = vmul.f32 %v4438_v5, %v1939_v53 }
 0x3f8   :  { %3487 = vpow2.f32 %v1736_v48  ;;  %v3466_v56 = vpop.eup %3465  ;;  %v1949_v45 = vpop.f32.mrf.mxu0  ;;  %v1740_v61 = vmul.f32 1.442695, %v4471_v15  ;;  %v4485_v11 = vadd.f32 %v4356_v47, %v1482_v12  ;;  %1274 = vrot.lane.b32.xlu0 %v1266_v42, %s3563_s19  ;;  %v2839_v60 = vadd.f32 -1.0, %v3464_v14 }
 0x3f9   :  { %3489 = vpow2.f32 %v1495_v63  ;;  %v3468_v62 = vpop.eup %3467  ;;  %v4481_v23 = vpop.f32.mrf.mxu1  ;;  %v1267_v57 = vsel %vm1251_vm1, %v4393_v58, %v2848_v40  ;;  %v1979_v55 = vmul.f32 1.442695, %v4476_v0  ;;  %v4497_v28 = vadd.f32 %v4430_v10, %v2204_v9 }
 0x3fa   :  { %v427_v31 = vpop.xlane.xlu0 %426  ;;  %v3470_v3 = vpop.eup %3469  ;;  %3491 = vpow2.f32 %v1501_v6  ;;  %v1964_v13 = vmul.f32 %v3468_v62, %v1949_v45  ;;  %1276 = vrot.lane.b32.xlu1 %v1267_v57, %s3563_s19  ;;  %v1028_v48 = vsel %vm1012_vm5, %v4399_v38, %v2842_v22  ;;  %v1499_v58 = vmul.f32 1.442695, %v4485_v11  ;;  %v3543_v22 = vld [vmem:[%s4802_s6] ss:$0 sm:$0xff]  ;;  %s3565_s6 = smov 40  }
 0x3fb   :  { %v3472_v49 = vpop.eup %3471  ;;  %3493 = vpow2.f32 %v1740_v61  ;;  %v2190_v59 = vpop.f32.mrf.mxu1  ;;  %v2850_v5 = vadd.f32 -1.0, %v3470_v3  ;;  %v1025_v30 = vsel %vm1009_vm6, %v4396_v54, %v2839_v60  ;;  %v4504_v24 = vadd.f32 %v4443_v29, %v1962_v20 }
 0x3fc   :  { %v3474_v47 = vpop.eup %3473  ;;  %3495 = vpow2.f32 %v1742_v4  ;;  %1039 = vrot.lane.b32.xlu0 %v1028_v48, %s3562_s3  ;;  %v2203_v27 = vmul.f32 %v4446_v32, %v2180_v21  ;;  %v2841_v17 = vadd.f32 -1.0, %v3472_v49  ;;  %v4508_v38 = vadd.f32 %v4443_v29, %v1964_v13 }
 0x3fd   :  { %v3476_v53 = vpop.eup %3475  ;;  %3497 = vrcp.f32 %v427_v31  ;;  %v2220_v54 = vmul.f32 1.442695, %v4497_v28  ;;  %v1269_v44 = vsel %vm1253_vm8, %v4417_v37, %v2850_v5  ;;  %v1965_v12 = vmul.f32 %v3466_v56, %v4464_v35 }
 0x3fe   :  { %v424_v36 = vpop.xlane.xlu0 %423  ;;  %v3478_v63 = vpop.eup %3477  ;;  %3499 = vpow2.f32 %v1979_v55  ;;  %1033 = vrot.lane.b32.xlu1 %v1025_v30, %s3562_s3  ;;  %v2856_v46 = vadd.f32 -1.0, %v3476_v53  ;;  %v1977_v6 = vmul.f32 1.442695, %v4504_v24  ;;  %v4519_v21 = vadd.f32 %v4430_v10, %v2203_v27 }
 0x3ff   :  { %v3480_v25 = vpop.eup %3479  ;;  %v2205_v19 = vmul.f32 %v3478_v63, %v2190_v59  ;;  %3501 = vrcp.f32 %v424_v36  ;;  %v1027_v40 = vsel %vm1011_vm10, %v4414_v26, %v2841_v17  ;;  %v1981_v61 = vmul.f32 1.442695, %v4508_v38  ;;  %v2266_v63 = vld [vmem:[%s4803_s7 + $0x38] sm:$0xff] }
 0x400   :  { %v3482_v50 = vpop.eup %3481  ;;  %3503 = vpow2.f32 %v1499_v58  ;;  %1280 = vrot.lane.b32.xlu0 %v1269_v44, %s3563_s19  ;;  %v2849_v45 = vadd.f32 -1.0, %v3480_v25  ;;  %v1508_v9 = vsel %vm1492_vm12, %v4422_v51, %v2856_v46  ;;  %v4532_v31 = vadd.f32 %v4443_v29, %v1965_v12  ;;  %3187 = vmatprep.subr.mxu1 %v2266_v63 }
 0x401   :  { %v3484_v32 = vpop.eup %3483  ;;  %v4523_v37 = vadd.f32 %v4430_v10, %v2205_v19  ;;  %v530_v35 = vmul.f32 %v3482_v50, %v4372_v34  ;;  %3505 = vpow2.f32 %v2220_v54  ;;  %v2206_v42 = vmul.f32 %v3474_v47, %v4481_v23  ;;  %3188 = vmatpush3.msra.mxu1 %v2266_v63 }
 0x402   :  { %1037 = vrot.lane.b32.xlu1 %v1027_v40, %s3562_s3  ;;  %v2864_v26 = vadd.f32 -1.0, %v3484_v32  ;;  %3507 = vpow2.f32 %v1977_v6  ;;  %v2218_v51 = vmul.f32 1.442695, %v4519_v21  ;;  %v1268_v29 = vsel %vm1252_vm13, %v4427_v39, %v2849_v45 }
 0x403   :  { %v4539_v34 = vadd.f32 %v3543_v22, %v530_v35  ;;  %v2222_v60 = vmul.f32 1.442695, %v4523_v37  ;;  %3509 = vpow2.f32 %v1981_v61  ;;  %v1983_v13 = vmul.f32 1.442695, %v4532_v31  ;;  %v2261_v35 = vld [vmem:[%s4803_s7 + $0x10] sm:$0xff] }
 0x404   :  { %v3486_v14 = vpop.eup %3485  ;;  %1517 = vrot.lane.b32.xlu0 %v1508_v9, %s3564_s20  ;;  %v4555_v39 = vadd.f32 %v4430_v10, %v2206_v42  ;;  %vm1732_vm0 = vcmp.gt.f32.partialorder %v4441_v16, 0.0  ;;  %vm1491_vm1 = vcmp.gt.f32.partialorder %v4450_v7, 0.0  ;;  %vm1494_vm5 = vcmp.gt.f32.partialorder %v4458_v33, 0.0  ;;  %v2260_v42 = vld [vmem:[%s4803_s7 + $0x8] sm:$0xff] }
 0x405   :  { %v3488_v62 = vpop.eup %3487  ;;  %v529_v3 = vmul.f32 %v3486_v14, %v4374_v18  ;;  %v549_v49 = vmul.f32 1.442695, %v4539_v34  ;;  %v1749_v18 = vsel %vm1733_vm15, %v4434_v41, %v2864_v26  ;;  %vm1734_vm6 = vcmp.gt.f32.partialorder %v4471_v15, 0.0 }
 0x406   :  { %v3490_v56 = vpop.eup %3489  ;;  %v2863_v4 = vadd.f32 -1.0, %v3488_v62  ;;  %1278 = vrot.lane.b32.xlu1 %v1268_v29, %s3563_s19  ;;  %vm1735_vm8 = vcmp.gt.f32.partialorder %v4468_v8, 0.0  ;;  %vm1974_vm10 = vcmp.gt.f32.partialorder %v4476_v0, 0.0  ;;  %vm1493_vm12 = vcmp.gt.f32.partialorder %v4485_v11, 0.0 }
 0x407   :  { %v3492_v23 = vpop.eup %3491  ;;  %v2855_v20 = vadd.f32 -1.0, %v3490_v56  ;;  %v4551_v57 = vadd.f32 %v3543_v22, %v529_v3  ;;  %3511 = vpow2.f32 %v549_v49  ;;  %vm2215_vm13 = vcmp.gt.f32.partialorder %v4497_v28, 0.0 }
 0x408   :  { %v3494_v55 = vpop.eup %3493  ;;  %1758 = vrot.lane.b32.xlu0 %v1749_v18, %s3565_s6  ;;  %3513 = vpow2.f32 %v2218_v51  ;;  %v1748_v59 = vsel %vm1732_vm0, %v4441_v16, %v2863_v4  ;;  %v2858_v41 = vadd.f32 -1.0, %v3492_v23  ;;  %v2224_v16 = vmul.f32 1.442695, %v4555_v39  ;;  %v2259_v23 = vld [vmem:[%s4803_s7] sm:$0xff] }
 0x409   :  { %v3496_v47 = vpop.eup %3495  ;;  %v547_v48 = vmul.f32 1.442695, %v4551_v57  ;;  %3515 = vpow2.f32 %v2222_v60  ;;  %v1507_v53 = vsel %vm1491_vm1, %v4450_v7, %v2855_v20  ;;  %v2865_v58 = vadd.f32 -1.0, %v3494_v55  ;;  %v2265_v7 = vld [vmem:[%s4803_s7 + $0x30] sm:$0xff] }
 0x40a   :  { %v3498_v5 = vpop.eup %3497  ;;  %1756 = vrot.lane.b32.xlu1 %v1748_v59, %s3565_s6  ;;  %v1510_v17 = vsel %vm1494_vm5, %v4458_v33, %v2858_v41  ;;  %3189 = vmatprep.subr.mxu1 %v2265_v7  ;;  %v2264_v33 = vld [vmem:[%s4803_s7 + $0x28] sm:$0xff]  ;;  %vm563_vm15 = vcmask 64512   ;;  %vm544_vm0 = vcmp.gt.f32.partialorder %v4539_v34, 0.0  ;;  %vm804_vm1 = vcmask 130112  }
 0x40b   :  { %v3500_v10 = vpop.eup %3499  ;;  %3517 = vpow2.f32 %v547_v48  ;;  %v532_v36 = vmul.f32 %v3498_v5, %v4376_v2  ;;  %v2866_v2 = vadd.f32 -1.0, %v3496_v47  ;;  %v1750_v50 = vsel %vm1734_vm6, %v4471_v15, %v2865_v58  ;;  %3190 = vmatpush3.msra.mxu1 %v2265_v7 }
 0x40c   :  { %v3502_v30 = vpop.eup %3501  ;;  %3519 = vpow2.f32 %v1983_v13  ;;  %1515 = vrot.lane.b32.xlu0 %v1507_v53, %s3564_s20  ;;  %v2872_v54 = vadd.f32 -1.0, %v3500_v10  ;;  %3191 = vmatprep.subr.mxu1 %v2264_v33  ;;  %vm1973_vm5 = vcmp.gt.f32.partialorder %v4504_v24, 0.0  ;;  %vm1975_vm6 = vcmp.gt.f32.partialorder %v4508_v38, 0.0 }
 0x40d   :  { %v3504_v27 = vpop.eup %3503  ;;  %v4575_v25 = vadd.f32 %v3543_v22, %v532_v36  ;;  %v531_v19 = vmul.f32 %v3502_v30, %v4378_v52  ;;  %3521 = vpow2.f32 %v2224_v16  ;;  %v2263_v52 = vld [vmem:[%s4803_s7 + $0x20] sm:$0xff]  ;;  %v1751_v15 = vsel %vm1735_vm8, %v4468_v8, %v2866_v2  ;;  %3192 = vmatpush3.msra.mxu1 %v2264_v33  ;;  %v2262_v8 = vld [vmem:[%s4803_s7 + $0x18] sm:$0xff] }
 0x40e   :  { %1521 = vrot.lane.b32.xlu1 %v1510_v17, %s3564_s20  ;;  %v3506_v32 = vpop.eup %3505  ;;  %v2857_v12 = vadd.f32 -1.0, %v3504_v27  ;;  %v1990_v40 = vsel %vm1974_vm10, %v4476_v0, %v2872_v54  ;;  %3193 = vmatprep.subr.mxu1 %v2263_v52  ;;  %vm543_vm8 = vcmp.gt.f32.partialorder %v4551_v57, 0.0  ;;  %vm2214_vm10 = vcmp.gt.f32.partialorder %v4519_v21, 0.0 }
 0x40f   :  { %v553_v44 = vmul.f32 1.442695, %v4575_v25  ;;  %v4582_v46 = vadd.f32 %v3543_v22, %v531_v19  ;;  %v3508_v6 = vpop.eup %3507  ;;  %v2880_v45 = vadd.f32 -1.0, %v3506_v32  ;;  %3194 = vmatpush3.msra.mxu1 %v2263_v52  ;;  %v4844_v41 = vmov 0.0  }
 0x410   :  { %1760 = vrot.lane.b32.xlu0 %v1750_v50, %s3565_s6  ;;  %v3510_v62 = vpop.eup %3509  ;;  %v1509_v0 = vsel %vm1493_vm12, %v4485_v11, %v2857_v12  ;;  %v2871_v61 = vadd.f32 -1.0, %v3508_v6  ;;  %3195 = vmatprep.subr.mxu1 %v2262_v8  ;;  %vm2216_vm12 = vcmp.gt.f32.partialorder %v4523_v37, 0.0 }
 0x411   :  { %3523 = vpow2.f32 %v553_v44  ;;  %v551_v14 = vmul.f32 1.442695, %v4582_v46  ;;  %3196 = vmatpush3.msra.mxu1 %v2262_v8  ;;  %v2231_v3 = vsel %vm2215_vm13, %v4497_v28, %v2880_v45  ;;  %v2873_v51 = vadd.f32 -1.0, %v3510_v62 }
 0x412   :  { %1762 = vrot.lane.b32.xlu1 %v1751_v15, %s3565_s6  ;;  %3197 = vmatprep.subr.mxu1 %v2261_v35  ;;  %v1989_v60 = vsel %vm1973_vm5, %v4504_v24, %v2871_v61  ;;  %vm1976_vm13 = vcmp.gt.f32.partialorder %v4532_v31, 0.0  ;;  %vm545_vm5 = vcmp.gt.f32.partialorder %v4582_v46, 0.0 }
 0x413   :  { %3525 = vpow2.f32 %v551_v14  ;;  %3198 = vmatpush3.msra.mxu1 %v2261_v35  ;;  %v1991_v20 = vsel %vm1975_vm6, %v4508_v38, %v2873_v51  ;;  %vm2217_vm6 = vcmp.gt.f32.partialorder %v4555_v39, 0.0 }
 0x414   :  { %1999 = vrot.lane.b32.xlu0 %v1990_v40, %s3566_s30  ;;  %v3512_v56 = vpop.eup %3511  ;;  %3199 = vmatprep.subr.mxu1 %v2260_v42 }
 0x415   :  { %v3514_v9 = vpop.eup %3513  ;;  %v2824_v26 = vadd.f32 -1.0, %v3512_v56  ;;  %3200 = vmatpush3.msra.mxu1 %v2260_v42 }
 0x416   :  { %1519 = vrot.lane.b32.xlu1 %v1509_v0, %s3564_s20  ;;  %v3516_v22 = vpop.eup %3515  ;;  %v2879_v18 = vadd.f32 -1.0, %v3514_v9  ;;  %3201 = vmatprep.subr.mxu1 %v2259_v23  ;;  %v2887_v9 = vld [vmem:[%s4804_s9] ss:$0 sm:$0xff] }
 0x417   :  { %v560_v4 = vsel %vm544_vm0, %v4539_v34, %v2824_v26  ;;  %v2881_v13 = vadd.f32 -1.0, %v3516_v22  ;;  %3202 = vmatpush3.msra.mxu1 %v2259_v23  ;;  %vm546_vm0 = vcmp.gt.f32.partialorder %v4575_v25, 0.0  ;;  %v2383_v23 = vld [vmem:[%s4805_s8] sm:$0x1] }
 0x418   :  { %v3518_v29 = vpop.eup %3517  ;;  %2240 = vrot.lane.b32.xlu0 %v2231_v3, %s3567_s17  ;;  %565 = vst.msk [vmem:[#allocation2 + $0x8] sm:$0xff] %vm563_vm15, %v560_v4  ;;  %v2230_v47 = vsel %vm2214_vm10, %v4519_v21, %v2879_v18  ;;  %3209 = vmatprep.subr.mxu1 %v4844_v41  ;;  %vm1286_vm10 = vcmask 261312  }
 0x419   :  { %v795_v11 = vpop.permute.xlu0 %794  ;;  %v3520_v28 = vpop.eup %3519  ;;  %v2823_v49 = vadd.f32 -1.0, %v3518_v29 }
 0x41a   :  { %806 = vst.msk [vmem:[#allocation2 + $0x8] sm:$0xff] %vm804_vm1, %v795_v11  ;;  %1997 = vrot.lane.b32.xlu1 %v1989_v60, %s3566_s30  ;;  %v3522_v24 = vpop.eup %3521  ;;  %v2874_v59 = vadd.f32 -1.0, %v3520_v28 }
 0x41b   :  { %v793_v34 = vpop.permute.xlu1 %792  ;;  %v559_v55 = vsel %vm543_vm8, %v4551_v57, %v2823_v49  ;;  %v2232_v57 = vsel %vm2216_vm12, %v4523_v37, %v2881_v13  ;;  %v2882_v10 = vadd.f32 -1.0, %v3522_v24  ;;  %vm1045_vm8 = vcmask 195712  }
 0x41c   :  { %2001 = vrot.lane.b32.xlu0 %v1991_v20, %s3566_s30  ;;  %564 = vst.msk [vmem:[#allocation2] sm:$0xff] %vm563_vm15, %v559_v55  ;;  %v1992_v21 = vsel %vm1976_vm13, %v4532_v31, %v2874_v59  ;;  %vm2009_vm12 = vcmask 458112   ;;  %vm2250_vm13 = vcmask 523712  }
 0x41d   :  { %805 = vst.msk [vmem:[#allocation2] sm:$0xff] %vm804_vm1, %v793_v34  ;;  %v2233_v36 = vsel %vm2217_vm6, %v4555_v39, %v2882_v10  ;;  %v4845_v34 = vld [vmem:[#allocation10_spill] sm:$0xff] }
 0x41e   :  { %v3524_v38 = vpop.eup %3523  ;;  %2238 = vrot.lane.b32.xlu1 %v2230_v47, %s3567_s17  ;;  %v4846_v20 = vsub.s32 0, %v4845_v34 }
 0x41f   :  { %v2826_v48 = vadd.f32 -1.0, %v3524_v38 }
 0x420   :  { %v3526_v5 = vpop.eup %3525  ;;  %2242 = vrot.lane.b32.xlu0 %v2232_v57, %s3567_s17 }
 0x421   :  { %v562_v53 = vsel %vm546_vm0, %v4575_v25, %v2826_v48  ;;  %v2825_v58 = vadd.f32 -1.0, %v3526_v5 }
 0x422   :  { %2003 = vrot.lane.b32.xlu1 %v1992_v21, %s3566_s30  ;;  %567 = vst.msk [vmem:[#allocation2 + $0x18] sm:$0xff] %vm563_vm15, %v562_v53 }
 0x423   :  { %v561_v37 = vsel %vm545_vm5, %v4582_v46, %v2825_v58 }
 0x424   :  { %566 = vst.msk [vmem:[#allocation2 + $0x10] sm:$0xff] %vm563_vm15, %v561_v37  ;;  %vm1527_vm15 = vcmask 326912  }
 0x426   :  { %2244 = vrot.lane.b32.xlu1 %v2233_v36, %s3567_s17 }
 0x462   :  { %v799_v31 = vpop.permute.xlu0 %798 }
 0x463   :  { %808 = vst.msk [vmem:[#allocation2 + $0x18] sm:$0xff] %vm804_vm1, %v799_v31 }
 0x464   :  { %v797_v30 = vpop.permute.xlu1 %796 }
 0x465   :  { %807 = vst.msk [vmem:[#allocation2 + $0x10] sm:$0xff] %vm804_vm1, %v797_v30  ;;  %vm1768_vm1 = vcmask 392512  }
 0x468   :  { %v1036_v16 = vpop.permute.xlu1 %1035 }
 0x469   :  { %1047 = vst.msk [vmem:[#allocation2 + $0x8] sm:$0xff] %vm1045_vm8, %v1036_v16 }
 0x46a   :  { %v1275_v63 = vpop.permute.xlu0 %1274 }
 0x46c   :  { %v1277_v7 = vpop.permute.xlu1 %1276 }
 0x46d   :  { %1288 = vst.msk [vmem:[#allocation2 + $0x8] sm:$0xff] %vm1286_vm10, %v1277_v7 }
 0x46e   :  { %v1040_v27 = vpop.permute.xlu0 %1039 }
 0x46f   :  { %1049 = vst.msk [vmem:[#allocation2 + $0x18] sm:$0xff] %vm1045_vm8, %v1040_v27 }
 0x470   :  { %v1034_v39 = vpop.permute.xlu1 %1033 }
 0x471   :  { %1046 = vst.msk [vmem:[#allocation2] sm:$0xff] %vm1045_vm8, %v1034_v39 }
 0x472   :  { %v1281_v17 = vpop.permute.xlu0 %1280  ;;  %1287 = vst.msk [vmem:[#allocation2] sm:$0xff] %vm1286_vm10, %v1275_v63 }
 0x473   :  { %1290 = vst.msk [vmem:[#allocation2 + $0x18] sm:$0xff] %vm1286_vm10, %v1281_v17 }
 0x474   :  { %v1038_v2 = vpop.permute.xlu1 %1037 }
 0x475   :  { %1048 = vst.msk [vmem:[#allocation2 + $0x10] sm:$0xff] %vm1045_vm8, %v1038_v2 }
 0x476   :  { %v1518_v25 = vpop.permute.xlu0 %1517 }
 0x477   :  { %1529 = vst.msk [vmem:[#allocation2 + $0x8] sm:$0xff] %vm1527_vm15, %v1518_v25 }
 0x478   :  { %v1279_v19 = vpop.permute.xlu1 %1278 }
 0x479   :  { %1289 = vst.msk [vmem:[#allocation2 + $0x10] sm:$0xff] %vm1286_vm10, %v1279_v19 }
 0x47a   :  { %v1759_v50 = vpop.permute.xlu0 %1758 }
 0x47b   :  { %1770 = vst.msk [vmem:[#allocation2 + $0x8] sm:$0xff] %vm1768_vm1, %v1759_v50 }
 0x47c   :  { %v1757_v54 = vpop.permute.xlu1 %1756 }
 0x47e   :  { %v1516_v44 = vpop.permute.xlu0 %1515 }
 0x47f   :  { %1528 = vst.msk [vmem:[#allocation2] sm:$0xff] %vm1527_vm15, %v1516_v44 }
 0x480   :  { %1769 = vst.msk [vmem:[#allocation2] sm:$0xff] %vm1768_vm1, %v1757_v54  ;;  %v1522_v46 = vpop.permute.xlu1 %1521 }
 0x481   :  { %1531 = vst.msk [vmem:[#allocation2 + $0x18] sm:$0xff] %vm1527_vm15, %v1522_v46 }
 0x482   :  { %v1761_v33 = vpop.permute.xlu0 %1760 }
 0x484   :  { %v1763_v32 = vpop.permute.xlu1 %1762 }
 0x485   :  { %1772 = vst.msk [vmem:[#allocation2 + $0x18] sm:$0xff] %vm1768_vm1, %v1763_v32 }
 0x486   :  { %v2000_v52 = vpop.permute.xlu0 %1999 }
 0x487   :  { %2011 = vst.msk [vmem:[#allocation2 + $0x8] sm:$0xff] %vm2009_vm12, %v2000_v52 }
 0x488   :  { %v1520_v15 = vpop.permute.xlu1 %1519 }
 0x489   :  { %1530 = vst.msk [vmem:[#allocation2 + $0x10] sm:$0xff] %vm1527_vm15, %v1520_v15 }
 0x48a   :  { %v2241_v12 = vpop.permute.xlu0 %2240  ;;  %1771 = vst.msk [vmem:[#allocation2 + $0x10] sm:$0xff] %vm1768_vm1, %v1761_v33 }
 0x48b   :  { %2252 = vst.msk [vmem:[#allocation2 + $0x8] sm:$0xff] %vm2250_vm13, %v2241_v12 }
 0x48c   :  { %v1998_v14 = vpop.permute.xlu1 %1997 }
 0x48d   :  { %2010 = vst.msk [vmem:[#allocation2] sm:$0xff] %vm2009_vm12, %v1998_v14 }
 0x48e   :  { %v2002_v6 = vpop.permute.xlu0 %2001 }
 0x48f   :  { %2012 = vst.msk [vmem:[#allocation2 + $0x10] sm:$0xff] %vm2009_vm12, %v2002_v6 }
 0x490   :  { %v2239_v40 = vpop.permute.xlu1 %2238 }
 0x491   :  { %2251 = vst.msk [vmem:[#allocation2] sm:$0xff] %vm2250_vm13, %v2239_v40 }
 0x492   :  { %v2243_v45 = vpop.permute.xlu0 %2242  ;;  %v2256_v56 = vld [vmem:[#allocation2 + $0x8] sm:$0xff] }
 0x493   :  { %2253 = vst.msk [vmem:[#allocation2 + $0x10] sm:$0xff] %vm2250_vm13, %v2243_v45 }
 0x494   :  { %v2004_v8 = vpop.permute.xlu1 %2003 }
 0x495   :  { %2013 = vst.msk [vmem:[#allocation2 + $0x18] sm:$0xff] %vm2009_vm12, %v2004_v8 }
 0x498   :  { %v2245_v62 = vpop.permute.xlu1 %2244  ;;  %v2255_v35 = vld [vmem:[#allocation2] sm:$0xff] }
 0x499   :  { %2254 = vst.msk [vmem:[#allocation2 + $0x18] sm:$0xff] %vm2250_vm13, %v2245_v62  ;;  %3203 = vmatprep.mubr.msk.f32.mxu1 %vm171_vm2, %v2255_v35 }
 0x49a   :  { %3204 = vmatmul.mubr.msk.f32.vlgmr.msra.gmra.mxu1 %vm171_vm2, %v2256_v56  ;;  %v2257_v0 = vld [vmem:[#allocation2 + $0x10] sm:$0xff] }
 0x49b   :  { %3206 = vmatprep.mubr.msk.f32.mxu1 %vm171_vm2, %v2257_v0  ;;  %v2719_v0 = vld [vmem:[%s4806_s11 + $0x78] sm:$0xff] }
 0x4a0   :  { %v2258_v61 = vld [vmem:[#allocation2 + $0x18] sm:$0xff] }
 0x4a1   :  { %3207 = vmatmul.mubr.msk.f32.gmra.mxu1 %vm171_vm2, %v2258_v61  ;;  %v2718_v61 = vld [vmem:[%s4806_s11 + $0x70] sm:$0xff] }
 0x4a2   :  { %3217 = vmatprep.mubr.msk.f32.mxu1 %vm3552_vm3, %v4844_v41 }
 0x55a   :  { %v3205_v26 = vpop.f32.mrf.mxu1 }
 0x55b   :  { %v2372_v42 = vmul.f32 %v3205_v26, %v2887_v9 }
 0x55c   :  { %v2345_v22 = vpop.f32.mrf.mxu1 }
 0x55d   :  { %2377 = vadd.xlane.f32.xlu1 %v2372_v42  ;;  %v2371_v3 = vmul.f32 %v2887_v9, %v2345_v22  ;;  %v2715_v42 = vld [vmem:[%s4806_s11 + $0x58] sm:$0xff] }
 0x55f   :  { %2375 = vadd.xlane.f32.xlu0 %v2371_v3  ;;  %v2713_v3 = vld [vmem:[%s4806_s11 + $0x48] sm:$0xff] }
 0x561   :  { %v3208_v11 = vpop.f32.mrf.mxu1 }
 0x562   :  { %3210 = vmatpush3.xpose.msra.mxu1 %v3208_v11  ;;  %3220 = vmatprep.subr.mxu0 %v3208_v11  ;;  %v2374_v4 = vmul.f32 %v3208_v11, %v2887_v9 }
 0x563   :  { %v2355_v51 = vpop.f32.mrf.mxu1  ;;  %3221 = vmatpush3.msra.mxu0 %v3208_v11  ;;  %3211 = vmatprep.subr.mxu1 %v4844_v41  ;;  %v2712_v11 = vld [vmem:[%s4806_s11 + $0x40] sm:$0xff] }
 0x564   :  { %3222 = vmatprep.subr.mxu0 %v2355_v51  ;;  %v2373_v29 = vmul.f32 %v2887_v9, %v2355_v51  ;;  %v2717_v9 = vld [vmem:[%s4806_s11 + $0x68] sm:$0xff] }
 0x565   :  { %3223 = vmatpush3.msra.mxu0 %v2355_v51 }
 0x566   :  { %3212 = vmatpush3.xpose.msra.mxu1 %v2355_v51  ;;  %3224 = vmatprep.subr.mxu0 %v3205_v26  ;;  %v2711_v51 = vld [vmem:[%s4806_s11 + $0x38] sm:$0xff] }
 0x567   :  { %2379 = vadd.xlane.f32.xlu0 %v2373_v29  ;;  %3225 = vmatpush3.msra.mxu0 %v3205_v26  ;;  %v2710_v29 = vld [vmem:[%s4806_s11 + $0x30] sm:$0xff] }
 0x568   :  { %3226 = vmatprep.subr.mxu0 %v2345_v22  ;;  %3213 = vmatprep.subr.mxu1 %v4844_v41 }
 0x569   :  { %3227 = vmatpush3.msra.mxu0 %v2345_v22 }
 0x56a   :  { %3214 = vmatpush3.xpose.msra.mxu1 %v3205_v26  ;;  %3245 = vmatprep.subr.mxu0 %v4844_v41  ;;  %v2716_v26 = vld [vmem:[%s4806_s11 + $0x60] sm:$0xff] }
 0x56b   :  { %2381 = vadd.xlane.f32.xlu0 %v2374_v4  ;;  %3215 = vmatprep.subr.mxu1 %v4844_v41  ;;  %v2709_v4 = vld [vmem:[%s4806_s11 + $0x28] sm:$0xff] }
 0x56e   :  { %3216 = vmatpush3.xpose.msra.mxu1 %v2345_v22  ;;  %v2714_v22 = vld [vmem:[%s4806_s11 + $0x50] sm:$0xff] }
 0x56f   :  { %3234 = vmatprep.subr.mxu1 %v4844_v41 }
 0x571   :  { %3218 = vmatmul.mubr.f32.vlgmr.msra.gmra.mxu1 %v2383_v23  ;;  %v2708_v23 = vld [vmem:[%s4806_s11 + $0x20] sm:$0xff] }
 0x572   :  { %3242 = vmatprep.mubr.msk.f32.mxu1 %vm3552_vm3, %v4844_v41 }
 0x5e6   :  { %v2378_v18 = vpop.xlane.xlu1 %2377 }
 0x5e8   :  { %v2376_v28 = vpop.xlane.xlu0 %2375 }
 0x5f0   :  { %v2380_v60 = vpop.xlane.xlu0 %2379 }
 0x5f4   :  { %v2382_v13 = vpop.xlane.xlu0 %2381 }
 0x631   :  { %v2450_v49 = vpop.f32.mrf.mxu1 }
 0x632   :  { %v2457_v55 = vrot.slane %v2450_v49, %v4846_v20  ;;  %v2705_v49 = vld [vmem:[%s4806_s11 + $0x8] sm:$0xff] }
 0x633   :  { %v3219_v24 = vpop.f32.mrf.mxu1 }
 0x634   :  { %v2458_v47 = vadd.f32 %v2457_v55, %v2376_v28  ;;  %v2459_v59 = vadd.f32 %v2457_v55, %v2378_v18  ;;  %v2460_v38 = vadd.f32 %v2457_v55, %v2380_v60  ;;  %v2461_v57 = vadd.f32 %v2457_v55, %v2382_v13  ;;  %v2707_v28 = vld [vmem:[%s4806_s11 + $0x18] sm:$0xff]  ;;  %v2706_v60 = vld [vmem:[%s4806_s11 + $0x10] sm:$0xff] }
 0x636   :  { %vm2462_vm2 = vcmp.gt.f32.partialorder %v2458_v47, 0.0  ;;  %v2466_v48 = vmul.f32 0.2, %v2458_v47  ;;  %vm2463_vm0 = vcmp.gt.f32.partialorder %v2459_v59, 0.0  ;;  %v2467_v5 = vmul.f32 0.2, %v2459_v59 }
 0x637   :  { %vm2464_vm5 = vcmp.gt.f32.partialorder %v2460_v38, 0.0  ;;  %v2468_v21 = vmul.f32 0.2, %v2460_v38  ;;  %vm2465_vm6 = vcmp.gt.f32.partialorder %v2461_v57, 0.0  ;;  %v2469_v10 = vmul.f32 0.2, %v2461_v57 }
 0x638   :  { %v2470_v53 = vsel %vm2462_vm2, %v2458_v47, %v2466_v48  ;;  %v2471_v58 = vsel %vm2463_vm0, %v2459_v59, %v2467_v5  ;;  %v2892_v5 = vld [vmem:[%s4807_s10] ss:$0 sm:$0xff] }
 0x639   :  { %v2474_v36 = vsel %vm50_vm14, %v2470_v53, -1e+30  ;;  %v2475_v30 = vsel %vm51_vm4, %v2471_v58, -1e+30  ;;  %v2472_v16 = vsel %vm2464_vm5, %v2460_v38, %v2468_v21  ;;  %v2473_v63 = vsel %vm2465_vm6, %v2461_v57, %v2469_v10 }
 0x63a   :  { %v2478_v7 = vsel %vm391_vm7, %v2474_v36, -inf  ;;  %v2481_v27 = vsel %vm391_vm7, %v2475_v30, -inf  ;;  %v2476_v39 = vsel %vm52_vm9, %v2472_v16, -1e+30  ;;  %v2477_v17 = vsel %vm53_vm11, %v2473_v63, -1e+30 }
 0x63b   :  { %2479 = vmax.xlane.f32.xlu1 %v2478_v7  ;;  %2482 = vmax.xlane.f32.xlu0 %v2481_v27  ;;  %v2484_v2 = vsel %vm391_vm7, %v2476_v39, -inf  ;;  %v2487_v25 = vsel %vm391_vm7, %v2477_v17, -inf  ;;  %v2630_v63 = vld [vmem:[%s4808_s2] sm:$0x3]  ;;  %v18_v27 = vstv %s4809_s12 }
 0x63c   :  { %v2704_v7 = vld [vmem:[%s4806_s11] sm:$0xff]  ;;  %19 = vst [vmem:[#allocation3] sm:$0x1] %v18_v27 }
 0x63f   :  { %2485 = vmax.xlane.f32.xlu1 %v2484_v2  ;;  %2488 = vmax.xlane.f32.xlu0 %v2487_v25 }
 0x643   :  { %v2894_v2 = vld [vmem:[#allocation3] ss:$0 sm:$0xff] }
 0x6c4   :  { %v2483_v19 = vpop.xlane.xlu0 %2482  ;;  %v2480_v50 = vpop.xlane.xlu1 %2479 }
 0x6c5   :  { %v2491_v54 = vsub.f32 %v2475_v30, %v2483_v19  ;;  %v2490_v44 = vsub.f32 %v2474_v36, %v2480_v50 }
 0x6c7   :  { %v2496_v46 = vmul.f32 1.442695, %v2491_v54  ;;  %v2494_v33 = vmul.f32 1.442695, %v2490_v44 }
 0x6c8   :  { %v2489_v32 = vpop.xlane.xlu0 %2488  ;;  %v2486_v52 = vpop.xlane.xlu1 %2485 }
 0x6c9   :  { %3527 = vpow2.f32 %v2496_v46  ;;  %v2493_v1 = vsub.f32 %v2477_v17, %v2489_v32  ;;  %v2492_v15 = vsub.f32 %v2476_v39, %v2486_v52 }
 0x6ca   :  { %3529 = vpow2.f32 %v2494_v33 }
 0x6cb   :  { %v2500_v43 = vmul.f32 1.442695, %v2493_v1  ;;  %v2498_v12 = vmul.f32 1.442695, %v2492_v15 }
 0x6cd   :  { %3531 = vpow2.f32 %v2500_v43 }
 0x6ce   :  { %3533 = vpow2.f32 %v2498_v12 }
 0x6d6   :  { %v3528_v14 = vpop.eup %3527 }
 0x6d7   :  { %v3530_v6 = vpop.eup %3529  ;;  %v2505_v35 = vsel %vm391_vm7, %v3528_v14, 0.0 }
 0x6d8   :  { %3228 = vmatprep.mubr.msk.f32.mxu0 %vm391_vm7, %v3530_v6  ;;  %v2502_v56 = vsel %vm391_vm7, %v3530_v6, 0.0 }
 0x6d9   :  { %3229 = vmatmul.mubr.msk.f32.vlgmr.msra.gmra.mxu0 %vm391_vm7, %v3528_v14 }
 0x6da   :  { %v3532_v40 = vpop.eup %3531  ;;  %3246 = vmatpush3.msra.mxu0 %v2719_v0 }
 0x6db   :  { %v3534_v45 = vpop.eup %3533  ;;  %v2511_v8 = vsel %vm391_vm7, %v3532_v40, 0.0  ;;  %3247 = vmatprep.subr.mxu0 %v4844_v41 }
 0x6dc   :  { %3231 = vmatprep.mubr.msk.f32.mxu0 %vm391_vm7, %v3534_v45  ;;  %2512 = vadd.xlane.f32.xlu1 %v2511_v8  ;;  %v2508_v62 = vsel %vm391_vm7, %v3534_v45, 0.0 }
 0x6dd   :  { %3232 = vmatmul.mubr.msk.f32.gmra.mxu0 %vm391_vm7, %v3532_v40  ;;  %2509 = vadd.xlane.f32.xlu0 %v2508_v62 }
 0x6de   :  { %3277 = vmatprep.mubr.msk.f32.mxu0 %vm3552_vm3, %v4844_v41  ;;  %3248 = vmatpush3.msra.mxu0 %v2718_v61  ;;  %vm2797_vm3 = vcmask 1024  }
 0x6df   :  { %3249 = vmatprep.subr.mxu0 %v4844_v41 }
 0x6e0   :  { %2506 = vadd.xlane.f32.xlu1 %v2505_v35  ;;  %3250 = vmatpush3.msra.mxu0 %v2717_v9 }
 0x6e1   :  { %2503 = vadd.xlane.f32.xlu0 %v2502_v56  ;;  %3251 = vmatprep.subr.mxu0 %v4844_v41 }
 0x6e2   :  { %3252 = vmatpush3.msra.mxu0 %v2716_v26 }
 0x6e3   :  { %3253 = vmatprep.subr.mxu0 %v4844_v41 }
 0x6e4   :  { %3254 = vmatpush3.msra.mxu0 %v2715_v42 }
 0x6e5   :  { %3255 = vmatprep.subr.mxu0 %v4844_v41 }
 0x6e6   :  { %3256 = vmatpush3.msra.mxu0 %v2714_v22 }
 0x6e7   :  { %3257 = vmatprep.subr.mxu0 %v4844_v41 }
 0x6e8   :  { %3258 = vmatpush3.msra.mxu0 %v2713_v3 }
 0x6e9   :  { %3259 = vmatprep.subr.mxu0 %v4844_v41 }
 0x6ea   :  { %3260 = vmatpush3.msra.mxu0 %v2712_v11 }
 0x6eb   :  { %3261 = vmatprep.subr.mxu0 %v4844_v41 }
 0x6ec   :  { %3262 = vmatpush3.msra.mxu0 %v2711_v51 }
 0x6ed   :  { %3263 = vmatprep.subr.mxu0 %v4844_v41 }
 0x6ee   :  { %3264 = vmatpush3.msra.mxu0 %v2710_v29 }
 0x6ef   :  { %3265 = vmatprep.subr.mxu0 %v4844_v41 }
 0x6f0   :  { %3266 = vmatpush3.msra.mxu0 %v2709_v4 }
 0x6f1   :  { %3267 = vmatprep.subr.mxu0 %v4844_v41 }
 0x6f2   :  { %3268 = vmatpush3.msra.mxu0 %v2708_v23 }
 0x6f3   :  { %3269 = vmatprep.subr.mxu0 %v4844_v41 }
 0x6f4   :  { %3270 = vmatpush3.msra.mxu0 %v2707_v28 }
 0x6f5   :  { %3271 = vmatprep.subr.mxu0 %v4844_v41 }
 0x6f6   :  { %3272 = vmatpush3.msra.mxu0 %v2706_v60 }
 0x6f7   :  { %3273 = vmatprep.subr.mxu0 %v4844_v41 }
 0x6f8   :  { %3274 = vmatpush3.msra.mxu0 %v2705_v49 }
 0x6f9   :  { %3275 = vmatprep.subr.mxu0 %v4844_v41 }
 0x6fa   :  { %3276 = vmatpush3.msra.mxu0 %v2704_v7 }
 0x765   :  { %v2513_v18 = vpop.xlane.xlu1 %2512 }
 0x766   :  { %v2510_v34 = vpop.xlane.xlu0 %2509  ;;  %3535 = vrcp.f32 %v2513_v18 }
 0x767   :  { %3537 = vrcp.f32 %v2510_v34 }
 0x769   :  { %v2507_v20 = vpop.xlane.xlu1 %2506 }
 0x76a   :  { %v2504_v55 = vpop.xlane.xlu0 %2503  ;;  %3539 = vrcp.f32 %v2507_v20 }
 0x76b   :  { %3541 = vrcp.f32 %v2504_v55 }
 0x773   :  { %v3536_v47 = vpop.eup %3535 }
 0x774   :  { %v3538_v38 = vpop.eup %3537 }
 0x777   :  { %v3540_v48 = vpop.eup %3539 }
 0x778   :  { %v3542_v37 = vpop.eup %3541 }
 0x799   :  { %v3230_v13 = vpop.f32.mrf.mxu0 }
 0x79a   :  { %v2616_v10 = vmul.f32 %v3540_v48, %v3230_v13 }
 0x79b   :  { %v2592_v24 = vpop.f32.mrf.mxu0 }
 0x79c   :  { %v2615_v36 = vmul.f32 %v3542_v37, %v2592_v24  ;;  %v2627_v30 = vadd.f32 %v2892_v5, %v2616_v10 }
 0x79d   :  { %v3233_v59 = vpop.f32.mrf.mxu0 }
 0x79e   :  { %v2618_v57 = vmul.f32 %v3536_v47, %v3233_v59  ;;  %v2626_v16 = vadd.f32 %v2892_v5, %v2615_v36 }
 0x79f   :  { %v2602_v21 = vpop.f32.mrf.mxu0 }
 0x7a0   :  { %v2629_v53 = vadd.f32 %v2892_v5, %v2618_v57  ;;  %v2617_v58 = vmul.f32 %v3538_v38, %v2602_v21 }
 0x7a2   :  { %v2628_v31 = vadd.f32 %v2892_v5, %v2617_v58  ;;  %3235 = vmatpush3.msra.mxu1 %v2629_v53 }
 0x7a3   :  { %3236 = vmatprep.subr.mxu1 %v4844_v41 }
 0x7a4   :  { %3237 = vmatpush3.msra.mxu1 %v2628_v31 }
 0x7a5   :  { %3238 = vmatprep.subr.mxu1 %v4844_v41 }
 0x7a6   :  { %3239 = vmatpush3.msra.mxu1 %v2627_v30 }
 0x7a7   :  { %3240 = vmatprep.subr.mxu1 %v4844_v41 }
 0x7a8   :  { %3241 = vmatpush3.msra.mxu1 %v2626_v16 }
 0x7a9   :  { %3243 = vmatmul.mubr.msk.f32.vlgmr.msra.gmra.mxu1 %vm391_vm7, %v2630_v63 }
 0x869   :  { %v2700_v39 = vpop.f32.mrf.mxu1 }
 0x86a   :  { %3278 = vmatmul.mubr.f32.vlgmr.msra.gmra.mxu0 %v2700_v39 }
 0x86b   :  { %v3244_v17 = vpop.f32.mrf.mxu1 }
 0x92a   :  { %v2793_v25 = vpop.f32.mrf.mxu0 }
 0x92b   :  { %v2794_v41 = vadd.f32 %v2894_v2, %v2793_v25 }
 0x92c   :  { %v3279_v19 = vpop.f32.mrf.mxu0 }
 0x92d   :  { %2798 = vst.msk [vmem:[%s4810_s13] sm:$0x3] %vm2797_vm3, %v2794_v41 }

</bundles_post_ra>
